<compile_context>
chip_gen: v5e
topology: v5e:2x2
jax: 0.10.0
libtpu: 0.0.40
codegen_flags: <defaults>
</compile_context>

<pallas_src>
import functools

import jax
import jax.numpy as jnp
from jax import lax
from jax.experimental import pallas as pl
from jax.experimental.pallas import tpu as pltpu


def _interleave_phases(phases, hh, ww):
    """phases[(ph, pw)] are (hh, ww) arrays.  Returns (2*hh, 2*ww) `out` with
    out[2*i + ph, 2*j + pw] = phases[(ph, pw)][i, j].  Pure VPU select/adds."""
    H, W = 2 * hh, 2 * ww
    # Column interleave (lane placement) per row-parity.
    col_idx = lax.broadcasted_iota(jnp.int32, (hh, W), 1)
    half_rows = []
    for ph in (0, 1):
        r = jnp.zeros((hh, W), jnp.float32)
        for pw in (0, 1):
            q = phases[(ph, pw)]
            for j in range(ww):
                r = r + jnp.where(col_idx == 2 * j + pw, q[:, j:j + 1], 0.0)
        half_rows.append(r)
    # Row interleave (sublane placement).
    row_idx = lax.broadcasted_iota(jnp.int32, (H, W), 0)
    out = jnp.zeros((H, W), jnp.float32)
    for ph in (0, 1):
        rp = half_rows[ph]
        for i in range(hh):
            out = out + jnp.where(row_idx == 2 * i + ph, rp[i:i + 1, :], 0.0)
    return out


def _convt_k2s2p1(x_ch, w_ref, b_ref, *, cin, cout, h, w):
    """ConvTranspose2d(kernel=2, stride=2, padding=1), phase-decomposed.

    x_ch : list of `cin` (h, w) f32 arrays (values, not refs).
    w_ref: flat SMEM ref of length cin*cout*4, PyTorch (cin, cout, kh, kw).
    b_ref: SMEM ref of length cout.
    Returns a list of `cout` (2h-2, 2w-2) f32 arrays.
    """
    hh, ww = h - 1, w - 1
    # Shifted input views, hoisted out of the output-channel loop (reused
    # by every oc).
    xs = {}
    for ic in range(cin):
        for ph in (0, 1):
            for pw in (0, 1):
                xs[(ic, ph, pw)] = x_ch[ic][ph:ph + hh, pw:pw + ww]
    outs = []
    for oc in range(cout):
        phases = {}
        for ph in (0, 1):
            for pw in (0, 1):
                kh, kw = 1 - ph, 1 - pw
                acc = jnp.zeros((hh, ww), jnp.float32) + b_ref[oc]
                for ic in range(cin):
                    wv = w_ref[((ic * cout + oc) * 2 + kh) * 2 + kw]
                    acc = acc + wv * xs[(ic, ph, pw)]
                phases[(ph, pw)] = acc
        outs.append(_interleave_phases(phases, hh, ww))
    return outs


def _fused_kernel(w1_ref, b1_ref, w2_ref, b2_ref, x_ref, o_ref, *, cin, cmid,
                  h, w):
    x = x_ref[...]                                  # (1, cin, h, w) VMEM block
    x_ch = [x[0, ic] for ic in range(cin)]
    # Layer 1: ConvT(cin -> cmid); intermediate stays in vregs.
    v1 = _convt_k2s2p1(x_ch, w1_ref, b1_ref, cin=cin, cout=cmid, h=h, w=w)
    h1, w1d = 2 * h - 2, 2 * w - 2
    # Layer 2: ConvT(cmid -> 1).
    v2 = _convt_k2s2p1(v1, w2_ref, b2_ref, cin=cmid, cout=1, h=h1, w=w1d)
    out = v2[0]
    # sigmoid = 1 / (1 + exp(-x)); exp and reciprocal both run on the EUP.
    out = pl.reciprocal(1.0 + jnp.exp(-out), approx=False)
    o_ref[0, 0] = out.astype(o_ref.dtype)           # single dense block store


def model_forward(x, params):
    w1, b1, w2, b2 = params
    n, cin, h, w = x.shape
    cin_w, cmid, k, _ = w1.shape
    assert cin == cin_w and k == 2 and w2.shape == (cmid, 1, 2, 2)
    ho, wo = 4 * h - 6, 4 * w - 6    # two stacked (k=2, s=2, p=1) ConvTs
    kernel = functools.partial(_fused_kernel, cin=cin, cmid=cmid, h=h, w=w)
    return pl.pallas_call(
        kernel,
        out_shape=jax.ShapeDtypeStruct((n, 1, ho, wo), x.dtype),
        grid=(n,),
        in_specs=[
            pl.BlockSpec(memory_space=pltpu.MemorySpace.SMEM),   # w1 (flat)
            pl.BlockSpec(memory_space=pltpu.MemorySpace.SMEM),   # b1
            pl.BlockSpec(memory_space=pltpu.MemorySpace.SMEM),   # w2 (flat)
            pl.BlockSpec(memory_space=pltpu.MemorySpace.SMEM),   # b2
            pl.BlockSpec((1, cin, h, w), lambda i: (i, 0, 0, 0)),
        ],
        out_specs=pl.BlockSpec((1, 1, ho, wo), lambda i: (i, 0, 0, 0)),
        compiler_params=pltpu.CompilerParams(
            dimension_semantics=("parallel",)),     # batch axis -> both TCs
    )(w1.reshape(-1), b1, w2.reshape(-1), b2, x)


# ----------------------------- pure-JAX reference ---------------------------
def _reference_convt(x, w, b, *, stride, padding):
    # PyTorch ConvTranspose2d semantics.
    k = w.shape[2]
    wf = jnp.flip(w, axis=(2, 3)).transpose(1, 0, 2, 3)   # (Cout, Cin, kH, kW)
    pad = k - 1 - padding
    out = lax.conv_general_dilated(
        x, wf, window_strides=(1, 1),
        padding=[(pad, pad), (pad, pad)],
        lhs_dilation=(stride, stride),
        dimension_numbers=("NCHW", "OIHW", "NCHW"))
    return out + b[None, :, None, None]


def _reference_forward(x, params):
    w1, b1, w2, b2 = params
    v1 = _reference_convt(x, w1, b1, stride=2, padding=1)
    v2 = _reference_convt(v1, w2, b2, stride=2, padding=1)
    return 1.0 / (1.0 + jnp.exp(-v2))


if __name__ == "__main__":
    key = jax.random.PRNGKey(0)
    k_x, k_w1, k_b1, k_w2, k_b2 = jax.random.split(key, 5)
    x = jax.random.normal(k_x, (1, 3, 4, 4), jnp.float32)
    # Deterministic synthetic parameters (shapes follow the module's __init__).
    w1 = jax.random.normal(k_w1, (3, 2, 2, 2), jnp.float32) * 0.3   # ConvT(3->2)
    b1 = jax.random.normal(k_b1, (2,), jnp.float32) * 0.1
    w2 = jax.random.normal(k_w2, (2, 1, 2, 2), jnp.float32) * 0.3   # ConvT(2->1)
    b2 = jax.random.normal(k_b2, (1,), jnp.float32) * 0.1
    params = (w1, b1, w2, b2)

    out = jax.jit(model_forward)(x, params)
    out = jax.block_until_ready(out)

    ref = _reference_forward(x, params)
    assert out.shape == (1, 1, 10, 10), out.shape
    assert jnp.allclose(out, ref, atol=1e-5, rtol=1e-5), float(
        jnp.max(jnp.abs(out - ref)))
    print("KERNEL_OK")
</pallas_src>

<mosaic_0001>
module attributes {stable_mosaic.version = 11 : i64} {
  func.func @_fused_kernel(%arg0: i32, %arg1: memref<24xf32, #tpu.memory_space<smem>>, %arg2: memref<2xf32, #tpu.memory_space<smem>>, %arg3: memref<8xf32, #tpu.memory_space<smem>>, %arg4: memref<1xf32, #tpu.memory_space<smem>>, %arg5: memref<1x3x4x4xf32, #tpu.memory_space<vmem>>, %arg6: memref<1x1x10x10xf32, #tpu.memory_space<vmem>>) attributes {dimension_semantics = [#tpu.dimension_semantics<parallel>], iteration_bounds = array<i64: 1>, scalar_prefetch = 0 : i64, scratch_operands = 0 : i64, tpu.core_type = #tpu.core_type<tc>, window_params = [{transform_indices = @transform_0, window_bounds = array<i64: 24>}, {transform_indices = @transform_1, window_bounds = array<i64: 2>}, {transform_indices = @transform_2, window_bounds = array<i64: 8>}, {transform_indices = @transform_3, window_bounds = array<i64: 1>}, {transform_indices = @transform_4, window_bounds = array<i64: 1, 3, 4, 4>}, {transform_indices = @transform_5, window_bounds = array<i64: 1, 1, 10, 10>}]} {
    %c0 = arith.constant 0 : index
    %c0_0 = arith.constant 0 : index
    %c0_1 = arith.constant 0 : index
    %c0_2 = arith.constant 0 : index
    %0 = vector.load %arg5[%c0, %c0_0, %c0_1, %c0_2] : memref<1x3x4x4xf32, #tpu.memory_space<vmem>>, vector<1x3x4x4xf32>
    %1 = vector.extract_strided_slice %0 {offsets = [0, 0, 0, 0], sizes = [1, 1, 4, 4], strides = [1, 1, 1, 1]} : vector<1x3x4x4xf32> to vector<1x1x4x4xf32>
    %2 = vector.shape_cast %1 : vector<1x1x4x4xf32> to vector<4x4xf32>
    %3 = vector.extract_strided_slice %0 {offsets = [0, 1, 0, 0], sizes = [1, 1, 4, 4], strides = [1, 1, 1, 1]} : vector<1x3x4x4xf32> to vector<1x1x4x4xf32>
    %4 = vector.shape_cast %3 : vector<1x1x4x4xf32> to vector<4x4xf32>
    %5 = vector.extract_strided_slice %0 {offsets = [0, 2, 0, 0], sizes = [1, 1, 4, 4], strides = [1, 1, 1, 1]} : vector<1x3x4x4xf32> to vector<1x1x4x4xf32>
    %6 = vector.shape_cast %5 : vector<1x1x4x4xf32> to vector<4x4xf32>
    %7 = vector.extract_strided_slice %2 {offsets = [0, 0], sizes = [3, 3], strides = [1, 1]} : vector<4x4xf32> to vector<3x3xf32>
    %8 = vector.extract_strided_slice %2 {offsets = [0, 1], sizes = [3, 3], strides = [1, 1]} : vector<4x4xf32> to vector<3x3xf32>
    %9 = vector.extract_strided_slice %2 {offsets = [1, 0], sizes = [3, 3], strides = [1, 1]} : vector<4x4xf32> to vector<3x3xf32>
    %10 = vector.extract_strided_slice %2 {offsets = [1, 1], sizes = [3, 3], strides = [1, 1]} : vector<4x4xf32> to vector<3x3xf32>
    %11 = vector.extract_strided_slice %4 {offsets = [0, 0], sizes = [3, 3], strides = [1, 1]} : vector<4x4xf32> to vector<3x3xf32>
    %12 = vector.extract_strided_slice %4 {offsets = [0, 1], sizes = [3, 3], strides = [1, 1]} : vector<4x4xf32> to vector<3x3xf32>
    %13 = vector.extract_strided_slice %4 {offsets = [1, 0], sizes = [3, 3], strides = [1, 1]} : vector<4x4xf32> to vector<3x3xf32>
    %14 = vector.extract_strided_slice %4 {offsets = [1, 1], sizes = [3, 3], strides = [1, 1]} : vector<4x4xf32> to vector<3x3xf32>
    %15 = vector.extract_strided_slice %6 {offsets = [0, 0], sizes = [3, 3], strides = [1, 1]} : vector<4x4xf32> to vector<3x3xf32>
    %16 = vector.extract_strided_slice %6 {offsets = [0, 1], sizes = [3, 3], strides = [1, 1]} : vector<4x4xf32> to vector<3x3xf32>
    %17 = vector.extract_strided_slice %6 {offsets = [1, 0], sizes = [3, 3], strides = [1, 1]} : vector<4x4xf32> to vector<3x3xf32>
    %18 = vector.extract_strided_slice %6 {offsets = [1, 1], sizes = [3, 3], strides = [1, 1]} : vector<4x4xf32> to vector<3x3xf32>
    %cst = arith.constant 0.000000e+00 : f32
    %19 = vector.broadcast %cst : f32 to vector<3x3xf32>
    %c0_3 = arith.constant 0 : index
    %20 = memref.load %arg2[%c0_3] : memref<2xf32, #tpu.memory_space<smem>>
    %21 = vector.broadcast %20 : f32 to vector<3x3xf32>
    %22 = arith.addf %19, %21 : vector<3x3xf32>
    %c3 = arith.constant 3 : index
    %23 = memref.load %arg1[%c3] : memref<24xf32, #tpu.memory_space<smem>>
    %24 = vector.broadcast %23 : f32 to vector<3x3xf32>
    %25 = arith.mulf %24, %7 : vector<3x3xf32>
    %26 = arith.addf %22, %25 : vector<3x3xf32>
    %c11 = arith.constant 11 : index
    %27 = memref.load %arg1[%c11] : memref<24xf32, #tpu.memory_space<smem>>
    %28 = vector.broadcast %27 : f32 to vector<3x3xf32>
    %29 = arith.mulf %28, %11 : vector<3x3xf32>
    %30 = arith.addf %26, %29 : vector<3x3xf32>
    %c19 = arith.constant 19 : index
    %31 = memref.load %arg1[%c19] : memref<24xf32, #tpu.memory_space<smem>>
    %32 = vector.broadcast %31 : f32 to vector<3x3xf32>
    %33 = arith.mulf %32, %15 : vector<3x3xf32>
    %34 = arith.addf %30, %33 : vector<3x3xf32>
    %cst_4 = arith.constant 0.000000e+00 : f32
    %35 = vector.broadcast %cst_4 : f32 to vector<3x3xf32>
    %c0_5 = arith.constant 0 : index
    %36 = memref.load %arg2[%c0_5] : memref<2xf32, #tpu.memory_space<smem>>
    %37 = vector.broadcast %36 : f32 to vector<3x3xf32>
    %38 = arith.addf %35, %37 : vector<3x3xf32>
    %c2 = arith.constant 2 : index
    %39 = memref.load %arg1[%c2] : memref<24xf32, #tpu.memory_space<smem>>
    %40 = vector.broadcast %39 : f32 to vector<3x3xf32>
    %41 = arith.mulf %40, %8 : vector<3x3xf32>
    %42 = arith.addf %38, %41 : vector<3x3xf32>
    %c10 = arith.constant 10 : index
    %43 = memref.load %arg1[%c10] : memref<24xf32, #tpu.memory_space<smem>>
    %44 = vector.broadcast %43 : f32 to vector<3x3xf32>
    %45 = arith.mulf %44, %12 : vector<3x3xf32>
    %46 = arith.addf %42, %45 : vector<3x3xf32>
    %c18 = arith.constant 18 : index
    %47 = memref.load %arg1[%c18] : memref<24xf32, #tpu.memory_space<smem>>
    %48 = vector.broadcast %47 : f32 to vector<3x3xf32>
    %49 = arith.mulf %48, %16 : vector<3x3xf32>
    %50 = arith.addf %46, %49 : vector<3x3xf32>
    %cst_6 = arith.constant 0.000000e+00 : f32
    %51 = vector.broadcast %cst_6 : f32 to vector<3x3xf32>
    %c0_7 = arith.constant 0 : index
    %52 = memref.load %arg2[%c0_7] : memref<2xf32, #tpu.memory_space<smem>>
    %53 = vector.broadcast %52 : f32 to vector<3x3xf32>
    %54 = arith.addf %51, %53 : vector<3x3xf32>
    %c1 = arith.constant 1 : index
    %55 = memref.load %arg1[%c1] : memref<24xf32, #tpu.memory_space<smem>>
    %56 = vector.broadcast %55 : f32 to vector<3x3xf32>
    %57 = arith.mulf %56, %9 : vector<3x3xf32>
    %58 = arith.addf %54, %57 : vector<3x3xf32>
    %c9 = arith.constant 9 : index
    %59 = memref.load %arg1[%c9] : memref<24xf32, #tpu.memory_space<smem>>
    %60 = vector.broadcast %59 : f32 to vector<3x3xf32>
    %61 = arith.mulf %60, %13 : vector<3x3xf32>
    %62 = arith.addf %58, %61 : vector<3x3xf32>
    %c17 = arith.constant 17 : index
    %63 = memref.load %arg1[%c17] : memref<24xf32, #tpu.memory_space<smem>>
    %64 = vector.broadcast %63 : f32 to vector<3x3xf32>
    %65 = arith.mulf %64, %17 : vector<3x3xf32>
    %66 = arith.addf %62, %65 : vector<3x3xf32>
    %cst_8 = arith.constant 0.000000e+00 : f32
    %67 = vector.broadcast %cst_8 : f32 to vector<3x3xf32>
    %c0_9 = arith.constant 0 : index
    %68 = memref.load %arg2[%c0_9] : memref<2xf32, #tpu.memory_space<smem>>
    %69 = vector.broadcast %68 : f32 to vector<3x3xf32>
    %70 = arith.addf %67, %69 : vector<3x3xf32>
    %c0_10 = arith.constant 0 : index
    %71 = memref.load %arg1[%c0_10] : memref<24xf32, #tpu.memory_space<smem>>
    %72 = vector.broadcast %71 : f32 to vector<3x3xf32>
    %73 = arith.mulf %72, %10 : vector<3x3xf32>
    %74 = arith.addf %70, %73 : vector<3x3xf32>
    %c8 = arith.constant 8 : index
    %75 = memref.load %arg1[%c8] : memref<24xf32, #tpu.memory_space<smem>>
    %76 = vector.broadcast %75 : f32 to vector<3x3xf32>
    %77 = arith.mulf %76, %14 : vector<3x3xf32>
    %78 = arith.addf %74, %77 : vector<3x3xf32>
    %c16 = arith.constant 16 : index
    %79 = memref.load %arg1[%c16] : memref<24xf32, #tpu.memory_space<smem>>
    %80 = vector.broadcast %79 : f32 to vector<3x3xf32>
    %81 = arith.mulf %80, %18 : vector<3x3xf32>
    %82 = arith.addf %78, %81 : vector<3x3xf32>
    %83 = tpu.iota {dimensions = array<i32: 1>} : vector<3x6xi32>
    %cst_11 = arith.constant 0.000000e+00 : f32
    %84 = vector.broadcast %cst_11 : f32 to vector<3x6xf32>
    %c0_i32 = arith.constant 0 : i32
    %85 = vector.broadcast %c0_i32 : i32 to vector<3x6xi32>
    %86 = arith.cmpi eq, %83, %85 : vector<3x6xi32>
    %87 = vector.extract_strided_slice %34 {offsets = [0, 0], sizes = [3, 1], strides = [1, 1]} : vector<3x3xf32> to vector<3x1xf32>
    %cst_12 = arith.constant 0.000000e+00 : f32
    %88 = vector.shape_cast %87 : vector<3x1xf32> to vector<3x1xf32>
    %89 = vector.broadcast %88 : vector<3x1xf32> to vector<3x6xf32>
    %90 = vector.broadcast %cst_12 : f32 to vector<3x6xf32>
    %91 = arith.select %86, %89, %90 : vector<3x6xi1>, vector<3x6xf32>
    %92 = arith.addf %84, %91 : vector<3x6xf32>
    %c2_i32 = arith.constant 2 : i32
    %93 = vector.broadcast %c2_i32 : i32 to vector<3x6xi32>
    %94 = arith.cmpi eq, %83, %93 : vector<3x6xi32>
    %95 = vector.extract_strided_slice %34 {offsets = [0, 1], sizes = [3, 1], strides = [1, 1]} : vector<3x3xf32> to vector<3x1xf32>
    %cst_13 = arith.constant 0.000000e+00 : f32
    %96 = vector.shape_cast %95 : vector<3x1xf32> to vector<3x1xf32>
    %97 = vector.broadcast %96 : vector<3x1xf32> to vector<3x6xf32>
    %98 = vector.broadcast %cst_13 : f32 to vector<3x6xf32>
    %99 = arith.select %94, %97, %98 : vector<3x6xi1>, vector<3x6xf32>
    %100 = arith.addf %92, %99 : vector<3x6xf32>
    %c4_i32 = arith.constant 4 : i32
    %101 = vector.broadcast %c4_i32 : i32 to vector<3x6xi32>
    %102 = arith.cmpi eq, %83, %101 : vector<3x6xi32>
    %103 = vector.extract_strided_slice %34 {offsets = [0, 2], sizes = [3, 1], strides = [1, 1]} : vector<3x3xf32> to vector<3x1xf32>
    %cst_14 = arith.constant 0.000000e+00 : f32
    %104 = vector.shape_cast %103 : vector<3x1xf32> to vector<3x1xf32>
    %105 = vector.broadcast %104 : vector<3x1xf32> to vector<3x6xf32>
    %106 = vector.broadcast %cst_14 : f32 to vector<3x6xf32>
    %107 = arith.select %102, %105, %106 : vector<3x6xi1>, vector<3x6xf32>
    %108 = arith.addf %100, %107 : vector<3x6xf32>
    %c1_i32 = arith.constant 1 : i32
    %109 = vector.broadcast %c1_i32 : i32 to vector<3x6xi32>
    %110 = arith.cmpi eq, %83, %109 : vector<3x6xi32>
    %111 = vector.extract_strided_slice %50 {offsets = [0, 0], sizes = [3, 1], strides = [1, 1]} : vector<3x3xf32> to vector<3x1xf32>
    %cst_15 = arith.constant 0.000000e+00 : f32
    %112 = vector.shape_cast %111 : vector<3x1xf32> to vector<3x1xf32>
    %113 = vector.broadcast %112 : vector<3x1xf32> to vector<3x6xf32>
    %114 = vector.broadcast %cst_15 : f32 to vector<3x6xf32>
    %115 = arith.select %110, %113, %114 : vector<3x6xi1>, vector<3x6xf32>
    %116 = arith.addf %108, %115 : vector<3x6xf32>
    %c3_i32 = arith.constant 3 : i32
    %117 = vector.broadcast %c3_i32 : i32 to vector<3x6xi32>
    %118 = arith.cmpi eq, %83, %117 : vector<3x6xi32>
    %119 = vector.extract_strided_slice %50 {offsets = [0, 1], sizes = [3, 1], strides = [1, 1]} : vector<3x3xf32> to vector<3x1xf32>
    %cst_16 = arith.constant 0.000000e+00 : f32
    %120 = vector.shape_cast %119 : vector<3x1xf32> to vector<3x1xf32>
    %121 = vector.broadcast %120 : vector<3x1xf32> to vector<3x6xf32>
    %122 = vector.broadcast %cst_16 : f32 to vector<3x6xf32>
    %123 = arith.select %118, %121, %122 : vector<3x6xi1>, vector<3x6xf32>
    %124 = arith.addf %116, %123 : vector<3x6xf32>
    %c5_i32 = arith.constant 5 : i32
    %125 = vector.broadcast %c5_i32 : i32 to vector<3x6xi32>
    %126 = arith.cmpi eq, %83, %125 : vector<3x6xi32>
    %127 = vector.extract_strided_slice %50 {offsets = [0, 2], sizes = [3, 1], strides = [1, 1]} : vector<3x3xf32> to vector<3x1xf32>
    %cst_17 = arith.constant 0.000000e+00 : f32
    %128 = vector.shape_cast %127 : vector<3x1xf32> to vector<3x1xf32>
    %129 = vector.broadcast %128 : vector<3x1xf32> to vector<3x6xf32>
    %130 = vector.broadcast %cst_17 : f32 to vector<3x6xf32>
    %131 = arith.select %126, %129, %130 : vector<3x6xi1>, vector<3x6xf32>
    %132 = arith.addf %124, %131 : vector<3x6xf32>
    %cst_18 = arith.constant 0.000000e+00 : f32
    %133 = vector.broadcast %cst_18 : f32 to vector<3x6xf32>
    %c0_i32_19 = arith.constant 0 : i32
    %134 = vector.broadcast %c0_i32_19 : i32 to vector<3x6xi32>
    %135 = arith.cmpi eq, %83, %134 : vector<3x6xi32>
    %136 = vector.extract_strided_slice %66 {offsets = [0, 0], sizes = [3, 1], strides = [1, 1]} : vector<3x3xf32> to vector<3x1xf32>
    %cst_20 = arith.constant 0.000000e+00 : f32
    %137 = vector.shape_cast %136 : vector<3x1xf32> to vector<3x1xf32>
    %138 = vector.broadcast %137 : vector<3x1xf32> to vector<3x6xf32>
    %139 = vector.broadcast %cst_20 : f32 to vector<3x6xf32>
    %140 = arith.select %135, %138, %139 : vector<3x6xi1>, vector<3x6xf32>
    %141 = arith.addf %133, %140 : vector<3x6xf32>
    %c2_i32_21 = arith.constant 2 : i32
    %142 = vector.broadcast %c2_i32_21 : i32 to vector<3x6xi32>
    %143 = arith.cmpi eq, %83, %142 : vector<3x6xi32>
    %144 = vector.extract_strided_slice %66 {offsets = [0, 1], sizes = [3, 1], strides = [1, 1]} : vector<3x3xf32> to vector<3x1xf32>
    %cst_22 = arith.constant 0.000000e+00 : f32
    %145 = vector.shape_cast %144 : vector<3x1xf32> to vector<3x1xf32>
    %146 = vector.broadcast %145 : vector<3x1xf32> to vector<3x6xf32>
    %147 = vector.broadcast %cst_22 : f32 to vector<3x6xf32>
    %148 = arith.select %143, %146, %147 : vector<3x6xi1>, vector<3x6xf32>
    %149 = arith.addf %141, %148 : vector<3x6xf32>
    %c4_i32_23 = arith.constant 4 : i32
    %150 = vector.broadcast %c4_i32_23 : i32 to vector<3x6xi32>
    %151 = arith.cmpi eq, %83, %150 : vector<3x6xi32>
    %152 = vector.extract_strided_slice %66 {offsets = [0, 2], sizes = [3, 1], strides = [1, 1]} : vector<3x3xf32> to vector<3x1xf32>
    %cst_24 = arith.constant 0.000000e+00 : f32
    %153 = vector.shape_cast %152 : vector<3x1xf32> to vector<3x1xf32>
    %154 = vector.broadcast %153 : vector<3x1xf32> to vector<3x6xf32>
    %155 = vector.broadcast %cst_24 : f32 to vector<3x6xf32>
    %156 = arith.select %151, %154, %155 : vector<3x6xi1>, vector<3x6xf32>
    %157 = arith.addf %149, %156 : vector<3x6xf32>
    %c1_i32_25 = arith.constant 1 : i32
    %158 = vector.broadcast %c1_i32_25 : i32 to vector<3x6xi32>
    %159 = arith.cmpi eq, %83, %158 : vector<3x6xi32>
    %160 = vector.extract_strided_slice %82 {offsets = [0, 0], sizes = [3, 1], strides = [1, 1]} : vector<3x3xf32> to vector<3x1xf32>
    %cst_26 = arith.constant 0.000000e+00 : f32
    %161 = vector.shape_cast %160 : vector<3x1xf32> to vector<3x1xf32>
    %162 = vector.broadcast %161 : vector<3x1xf32> to vector<3x6xf32>
    %163 = vector.broadcast %cst_26 : f32 to vector<3x6xf32>
    %164 = arith.select %159, %162, %163 : vector<3x6xi1>, vector<3x6xf32>
    %165 = arith.addf %157, %164 : vector<3x6xf32>
    %c3_i32_27 = arith.constant 3 : i32
    %166 = vector.broadcast %c3_i32_27 : i32 to vector<3x6xi32>
    %167 = arith.cmpi eq, %83, %166 : vector<3x6xi32>
    %168 = vector.extract_strided_slice %82 {offsets = [0, 1], sizes = [3, 1], strides = [1, 1]} : vector<3x3xf32> to vector<3x1xf32>
    %cst_28 = arith.constant 0.000000e+00 : f32
    %169 = vector.shape_cast %168 : vector<3x1xf32> to vector<3x1xf32>
    %170 = vector.broadcast %169 : vector<3x1xf32> to vector<3x6xf32>
    %171 = vector.broadcast %cst_28 : f32 to vector<3x6xf32>
    %172 = arith.select %167, %170, %171 : vector<3x6xi1>, vector<3x6xf32>
    %173 = arith.addf %165, %172 : vector<3x6xf32>
    %c5_i32_29 = arith.constant 5 : i32
    %174 = vector.broadcast %c5_i32_29 : i32 to vector<3x6xi32>
    %175 = arith.cmpi eq, %83, %174 : vector<3x6xi32>
    %176 = vector.extract_strided_slice %82 {offsets = [0, 2], sizes = [3, 1], strides = [1, 1]} : vector<3x3xf32> to vector<3x1xf32>
    %cst_30 = arith.constant 0.000000e+00 : f32
    %177 = vector.shape_cast %176 : vector<3x1xf32> to vector<3x1xf32>
    %178 = vector.broadcast %177 : vector<3x1xf32> to vector<3x6xf32>
    %179 = vector.broadcast %cst_30 : f32 to vector<3x6xf32>
    %180 = arith.select %175, %178, %179 : vector<3x6xi1>, vector<3x6xf32>
    %181 = arith.addf %173, %180 : vector<3x6xf32>
    %182 = tpu.iota {dimensions = array<i32: 0>} : vector<6x6xi32>
    %cst_31 = arith.constant 0.000000e+00 : f32
    %183 = vector.broadcast %cst_31 : f32 to vector<6x6xf32>
    %c0_i32_32 = arith.constant 0 : i32
    %184 = vector.broadcast %c0_i32_32 : i32 to vector<6x6xi32>
    %185 = arith.cmpi eq, %182, %184 : vector<6x6xi32>
    %186 = vector.extract_strided_slice %132 {offsets = [0, 0], sizes = [1, 6], strides = [1, 1]} : vector<3x6xf32> to vector<1x6xf32>
    %cst_33 = arith.constant 0.000000e+00 : f32
    %187 = vector.shape_cast %186 : vector<1x6xf32> to vector<1x6xf32>
    %188 = vector.broadcast %187 : vector<1x6xf32> to vector<6x6xf32>
    %189 = vector.broadcast %cst_33 : f32 to vector<6x6xf32>
    %190 = arith.select %185, %188, %189 : vector<6x6xi1>, vector<6x6xf32>
    %191 = arith.addf %183, %190 : vector<6x6xf32>
    %c2_i32_34 = arith.constant 2 : i32
    %192 = vector.broadcast %c2_i32_34 : i32 to vector<6x6xi32>
    %193 = arith.cmpi eq, %182, %192 : vector<6x6xi32>
    %194 = vector.extract_strided_slice %132 {offsets = [1, 0], sizes = [1, 6], strides = [1, 1]} : vector<3x6xf32> to vector<1x6xf32>
    %cst_35 = arith.constant 0.000000e+00 : f32
    %195 = vector.shape_cast %194 : vector<1x6xf32> to vector<1x6xf32>
    %196 = vector.broadcast %195 : vector<1x6xf32> to vector<6x6xf32>
    %197 = vector.broadcast %cst_35 : f32 to vector<6x6xf32>
    %198 = arith.select %193, %196, %197 : vector<6x6xi1>, vector<6x6xf32>
    %199 = arith.addf %191, %198 : vector<6x6xf32>
    %c4_i32_36 = arith.constant 4 : i32
    %200 = vector.broadcast %c4_i32_36 : i32 to vector<6x6xi32>
    %201 = arith.cmpi eq, %182, %200 : vector<6x6xi32>
    %202 = vector.extract_strided_slice %132 {offsets = [2, 0], sizes = [1, 6], strides = [1, 1]} : vector<3x6xf32> to vector<1x6xf32>
    %cst_37 = arith.constant 0.000000e+00 : f32
    %203 = vector.shape_cast %202 : vector<1x6xf32> to vector<1x6xf32>
    %204 = vector.broadcast %203 : vector<1x6xf32> to vector<6x6xf32>
    %205 = vector.broadcast %cst_37 : f32 to vector<6x6xf32>
    %206 = arith.select %201, %204, %205 : vector<6x6xi1>, vector<6x6xf32>
    %207 = arith.addf %199, %206 : vector<6x6xf32>
    %c1_i32_38 = arith.constant 1 : i32
    %208 = vector.broadcast %c1_i32_38 : i32 to vector<6x6xi32>
    %209 = arith.cmpi eq, %182, %208 : vector<6x6xi32>
    %210 = vector.extract_strided_slice %181 {offsets = [0, 0], sizes = [1, 6], strides = [1, 1]} : vector<3x6xf32> to vector<1x6xf32>
    %cst_39 = arith.constant 0.000000e+00 : f32
    %211 = vector.shape_cast %210 : vector<1x6xf32> to vector<1x6xf32>
    %212 = vector.broadcast %211 : vector<1x6xf32> to vector<6x6xf32>
    %213 = vector.broadcast %cst_39 : f32 to vector<6x6xf32>
    %214 = arith.select %209, %212, %213 : vector<6x6xi1>, vector<6x6xf32>
    %215 = arith.addf %207, %214 : vector<6x6xf32>
    %c3_i32_40 = arith.constant 3 : i32
    %216 = vector.broadcast %c3_i32_40 : i32 to vector<6x6xi32>
    %217 = arith.cmpi eq, %182, %216 : vector<6x6xi32>
    %218 = vector.extract_strided_slice %181 {offsets = [1, 0], sizes = [1, 6], strides = [1, 1]} : vector<3x6xf32> to vector<1x6xf32>
    %cst_41 = arith.constant 0.000000e+00 : f32
    %219 = vector.shape_cast %218 : vector<1x6xf32> to vector<1x6xf32>
    %220 = vector.broadcast %219 : vector<1x6xf32> to vector<6x6xf32>
    %221 = vector.broadcast %cst_41 : f32 to vector<6x6xf32>
    %222 = arith.select %217, %220, %221 : vector<6x6xi1>, vector<6x6xf32>
    %223 = arith.addf %215, %222 : vector<6x6xf32>
    %c5_i32_42 = arith.constant 5 : i32
    %224 = vector.broadcast %c5_i32_42 : i32 to vector<6x6xi32>
    %225 = arith.cmpi eq, %182, %224 : vector<6x6xi32>
    %226 = vector.extract_strided_slice %181 {offsets = [2, 0], sizes = [1, 6], strides = [1, 1]} : vector<3x6xf32> to vector<1x6xf32>
    %cst_43 = arith.constant 0.000000e+00 : f32
    %227 = vector.shape_cast %226 : vector<1x6xf32> to vector<1x6xf32>
    %228 = vector.broadcast %227 : vector<1x6xf32> to vector<6x6xf32>
    %229 = vector.broadcast %cst_43 : f32 to vector<6x6xf32>
    %230 = arith.select %225, %228, %229 : vector<6x6xi1>, vector<6x6xf32>
    %231 = arith.addf %223, %230 : vector<6x6xf32>
    %cst_44 = arith.constant 0.000000e+00 : f32
    %232 = vector.broadcast %cst_44 : f32 to vector<3x3xf32>
    %c1_45 = arith.constant 1 : index
    %233 = memref.load %arg2[%c1_45] : memref<2xf32, #tpu.memory_space<smem>>
    %234 = vector.broadcast %233 : f32 to vector<3x3xf32>
    %235 = arith.addf %232, %234 : vector<3x3xf32>
    %c7 = arith.constant 7 : index
    %236 = memref.load %arg1[%c7] : memref<24xf32, #tpu.memory_space<smem>>
    %237 = vector.broadcast %236 : f32 to vector<3x3xf32>
    %238 = arith.mulf %237, %7 : vector<3x3xf32>
    %239 = arith.addf %235, %238 : vector<3x3xf32>
    %c15 = arith.constant 15 : index
    %240 = memref.load %arg1[%c15] : memref<24xf32, #tpu.memory_space<smem>>
    %241 = vector.broadcast %240 : f32 to vector<3x3xf32>
    %242 = arith.mulf %241, %11 : vector<3x3xf32>
    %243 = arith.addf %239, %242 : vector<3x3xf32>
    %c23 = arith.constant 23 : index
    %244 = memref.load %arg1[%c23] : memref<24xf32, #tpu.memory_space<smem>>
    %245 = vector.broadcast %244 : f32 to vector<3x3xf32>
    %246 = arith.mulf %245, %15 : vector<3x3xf32>
    %247 = arith.addf %243, %246 : vector<3x3xf32>
    %cst_46 = arith.constant 0.000000e+00 : f32
    %248 = vector.broadcast %cst_46 : f32 to vector<3x3xf32>
    %c1_47 = arith.constant 1 : index
    %249 = memref.load %arg2[%c1_47] : memref<2xf32, #tpu.memory_space<smem>>
    %250 = vector.broadcast %249 : f32 to vector<3x3xf32>
    %251 = arith.addf %248, %250 : vector<3x3xf32>
    %c6 = arith.constant 6 : index
    %252 = memref.load %arg1[%c6] : memref<24xf32, #tpu.memory_space<smem>>
    %253 = vector.broadcast %252 : f32 to vector<3x3xf32>
    %254 = arith.mulf %253, %8 : vector<3x3xf32>
    %255 = arith.addf %251, %254 : vector<3x3xf32>
    %c14 = arith.constant 14 : index
    %256 = memref.load %arg1[%c14] : memref<24xf32, #tpu.memory_space<smem>>
    %257 = vector.broadcast %256 : f32 to vector<3x3xf32>
    %258 = arith.mulf %257, %12 : vector<3x3xf32>
    %259 = arith.addf %255, %258 : vector<3x3xf32>
    %c22 = arith.constant 22 : index
    %260 = memref.load %arg1[%c22] : memref<24xf32, #tpu.memory_space<smem>>
    %261 = vector.broadcast %260 : f32 to vector<3x3xf32>
    %262 = arith.mulf %261, %16 : vector<3x3xf32>
    %263 = arith.addf %259, %262 : vector<3x3xf32>
    %cst_48 = arith.constant 0.000000e+00 : f32
    %264 = vector.broadcast %cst_48 : f32 to vector<3x3xf32>
    %c1_49 = arith.constant 1 : index
    %265 = memref.load %arg2[%c1_49] : memref<2xf32, #tpu.memory_space<smem>>
    %266 = vector.broadcast %265 : f32 to vector<3x3xf32>
    %267 = arith.addf %264, %266 : vector<3x3xf32>
    %c5 = arith.constant 5 : index
    %268 = memref.load %arg1[%c5] : memref<24xf32, #tpu.memory_space<smem>>
    %269 = vector.broadcast %268 : f32 to vector<3x3xf32>
    %270 = arith.mulf %269, %9 : vector<3x3xf32>
    %271 = arith.addf %267, %270 : vector<3x3xf32>
    %c13 = arith.constant 13 : index
    %272 = memref.load %arg1[%c13] : memref<24xf32, #tpu.memory_space<smem>>
    %273 = vector.broadcast %272 : f32 to vector<3x3xf32>
    %274 = arith.mulf %273, %13 : vector<3x3xf32>
    %275 = arith.addf %271, %274 : vector<3x3xf32>
    %c21 = arith.constant 21 : index
    %276 = memref.load %arg1[%c21] : memref<24xf32, #tpu.memory_space<smem>>
    %277 = vector.broadcast %276 : f32 to vector<3x3xf32>
    %278 = arith.mulf %277, %17 : vector<3x3xf32>
    %279 = arith.addf %275, %278 : vector<3x3xf32>
    %cst_50 = arith.constant 0.000000e+00 : f32
    %280 = vector.broadcast %cst_50 : f32 to vector<3x3xf32>
    %c1_51 = arith.constant 1 : index
    %281 = memref.load %arg2[%c1_51] : memref<2xf32, #tpu.memory_space<smem>>
    %282 = vector.broadcast %281 : f32 to vector<3x3xf32>
    %283 = arith.addf %280, %282 : vector<3x3xf32>
    %c4 = arith.constant 4 : index
    %284 = memref.load %arg1[%c4] : memref<24xf32, #tpu.memory_space<smem>>
    %285 = vector.broadcast %284 : f32 to vector<3x3xf32>
    %286 = arith.mulf %285, %10 : vector<3x3xf32>
    %287 = arith.addf %283, %286 : vector<3x3xf32>
    %c12 = arith.constant 12 : index
    %288 = memref.load %arg1[%c12] : memref<24xf32, #tpu.memory_space<smem>>
    %289 = vector.broadcast %288 : f32 to vector<3x3xf32>
    %290 = arith.mulf %289, %14 : vector<3x3xf32>
    %291 = arith.addf %287, %290 : vector<3x3xf32>
    %c20 = arith.constant 20 : index
    %292 = memref.load %arg1[%c20] : memref<24xf32, #tpu.memory_space<smem>>
    %293 = vector.broadcast %292 : f32 to vector<3x3xf32>
    %294 = arith.mulf %293, %18 : vector<3x3xf32>
    %295 = arith.addf %291, %294 : vector<3x3xf32>
    %296 = tpu.iota {dimensions = array<i32: 1>} : vector<3x6xi32>
    %cst_52 = arith.constant 0.000000e+00 : f32
    %297 = vector.broadcast %cst_52 : f32 to vector<3x6xf32>
    %c0_i32_53 = arith.constant 0 : i32
    %298 = vector.broadcast %c0_i32_53 : i32 to vector<3x6xi32>
    %299 = arith.cmpi eq, %296, %298 : vector<3x6xi32>
    %300 = vector.extract_strided_slice %247 {offsets = [0, 0], sizes = [3, 1], strides = [1, 1]} : vector<3x3xf32> to vector<3x1xf32>
    %cst_54 = arith.constant 0.000000e+00 : f32
    %301 = vector.shape_cast %300 : vector<3x1xf32> to vector<3x1xf32>
    %302 = vector.broadcast %301 : vector<3x1xf32> to vector<3x6xf32>
    %303 = vector.broadcast %cst_54 : f32 to vector<3x6xf32>
    %304 = arith.select %299, %302, %303 : vector<3x6xi1>, vector<3x6xf32>
    %305 = arith.addf %297, %304 : vector<3x6xf32>
    %c2_i32_55 = arith.constant 2 : i32
    %306 = vector.broadcast %c2_i32_55 : i32 to vector<3x6xi32>
    %307 = arith.cmpi eq, %296, %306 : vector<3x6xi32>
    %308 = vector.extract_strided_slice %247 {offsets = [0, 1], sizes = [3, 1], strides = [1, 1]} : vector<3x3xf32> to vector<3x1xf32>
    %cst_56 = arith.constant 0.000000e+00 : f32
    %309 = vector.shape_cast %308 : vector<3x1xf32> to vector<3x1xf32>
    %310 = vector.broadcast %309 : vector<3x1xf32> to vector<3x6xf32>
    %311 = vector.broadcast %cst_56 : f32 to vector<3x6xf32>
    %312 = arith.select %307, %310, %311 : vector<3x6xi1>, vector<3x6xf32>
    %313 = arith.addf %305, %312 : vector<3x6xf32>
    %c4_i32_57 = arith.constant 4 : i32
    %314 = vector.broadcast %c4_i32_57 : i32 to vector<3x6xi32>
    %315 = arith.cmpi eq, %296, %314 : vector<3x6xi32>
    %316 = vector.extract_strided_slice %247 {offsets = [0, 2], sizes = [3, 1], strides = [1, 1]} : vector<3x3xf32> to vector<3x1xf32>
    %cst_58 = arith.constant 0.000000e+00 : f32
    %317 = vector.shape_cast %316 : vector<3x1xf32> to vector<3x1xf32>
    %318 = vector.broadcast %317 : vector<3x1xf32> to vector<3x6xf32>
    %319 = vector.broadcast %cst_58 : f32 to vector<3x6xf32>
    %320 = arith.select %315, %318, %319 : vector<3x6xi1>, vector<3x6xf32>
    %321 = arith.addf %313, %320 : vector<3x6xf32>
    %c1_i32_59 = arith.constant 1 : i32
    %322 = vector.broadcast %c1_i32_59 : i32 to vector<3x6xi32>
    %323 = arith.cmpi eq, %296, %322 : vector<3x6xi32>
    %324 = vector.extract_strided_slice %263 {offsets = [0, 0], sizes = [3, 1], strides = [1, 1]} : vector<3x3xf32> to vector<3x1xf32>
    %cst_60 = arith.constant 0.000000e+00 : f32
    %325 = vector.shape_cast %324 : vector<3x1xf32> to vector<3x1xf32>
    %326 = vector.broadcast %325 : vector<3x1xf32> to vector<3x6xf32>
    %327 = vector.broadcast %cst_60 : f32 to vector<3x6xf32>
    %328 = arith.select %323, %326, %327 : vector<3x6xi1>, vector<3x6xf32>
    %329 = arith.addf %321, %328 : vector<3x6xf32>
    %c3_i32_61 = arith.constant 3 : i32
    %330 = vector.broadcast %c3_i32_61 : i32 to vector<3x6xi32>
    %331 = arith.cmpi eq, %296, %330 : vector<3x6xi32>
    %332 = vector.extract_strided_slice %263 {offsets = [0, 1], sizes = [3, 1], strides = [1, 1]} : vector<3x3xf32> to vector<3x1xf32>
    %cst_62 = arith.constant 0.000000e+00 : f32
    %333 = vector.shape_cast %332 : vector<3x1xf32> to vector<3x1xf32>
    %334 = vector.broadcast %333 : vector<3x1xf32> to vector<3x6xf32>
    %335 = vector.broadcast %cst_62 : f32 to vector<3x6xf32>
    %336 = arith.select %331, %334, %335 : vector<3x6xi1>, vector<3x6xf32>
    %337 = arith.addf %329, %336 : vector<3x6xf32>
    %c5_i32_63 = arith.constant 5 : i32
    %338 = vector.broadcast %c5_i32_63 : i32 to vector<3x6xi32>
    %339 = arith.cmpi eq, %296, %338 : vector<3x6xi32>
    %340 = vector.extract_strided_slice %263 {offsets = [0, 2], sizes = [3, 1], strides = [1, 1]} : vector<3x3xf32> to vector<3x1xf32>
    %cst_64 = arith.constant 0.000000e+00 : f32
    %341 = vector.shape_cast %340 : vector<3x1xf32> to vector<3x1xf32>
    %342 = vector.broadcast %341 : vector<3x1xf32> to vector<3x6xf32>
    %343 = vector.broadcast %cst_64 : f32 to vector<3x6xf32>
    %344 = arith.select %339, %342, %343 : vector<3x6xi1>, vector<3x6xf32>
    %345 = arith.addf %337, %344 : vector<3x6xf32>
    %cst_65 = arith.constant 0.000000e+00 : f32
    %346 = vector.broadcast %cst_65 : f32 to vector<3x6xf32>
    %c0_i32_66 = arith.constant 0 : i32
    %347 = vector.broadcast %c0_i32_66 : i32 to vector<3x6xi32>
    %348 = arith.cmpi eq, %296, %347 : vector<3x6xi32>
    %349 = vector.extract_strided_slice %279 {offsets = [0, 0], sizes = [3, 1], strides = [1, 1]} : vector<3x3xf32> to vector<3x1xf32>
    %cst_67 = arith.constant 0.000000e+00 : f32
    %350 = vector.shape_cast %349 : vector<3x1xf32> to vector<3x1xf32>
    %351 = vector.broadcast %350 : vector<3x1xf32> to vector<3x6xf32>
    %352 = vector.broadcast %cst_67 : f32 to vector<3x6xf32>
    %353 = arith.select %348, %351, %352 : vector<3x6xi1>, vector<3x6xf32>
    %354 = arith.addf %346, %353 : vector<3x6xf32>
    %c2_i32_68 = arith.constant 2 : i32
    %355 = vector.broadcast %c2_i32_68 : i32 to vector<3x6xi32>
    %356 = arith.cmpi eq, %296, %355 : vector<3x6xi32>
    %357 = vector.extract_strided_slice %279 {offsets = [0, 1], sizes = [3, 1], strides = [1, 1]} : vector<3x3xf32> to vector<3x1xf32>
    %cst_69 = arith.constant 0.000000e+00 : f32
    %358 = vector.shape_cast %357 : vector<3x1xf32> to vector<3x1xf32>
    %359 = vector.broadcast %358 : vector<3x1xf32> to vector<3x6xf32>
    %360 = vector.broadcast %cst_69 : f32 to vector<3x6xf32>
    %361 = arith.select %356, %359, %360 : vector<3x6xi1>, vector<3x6xf32>
    %362 = arith.addf %354, %361 : vector<3x6xf32>
    %c4_i32_70 = arith.constant 4 : i32
    %363 = vector.broadcast %c4_i32_70 : i32 to vector<3x6xi32>
    %364 = arith.cmpi eq, %296, %363 : vector<3x6xi32>
    %365 = vector.extract_strided_slice %279 {offsets = [0, 2], sizes = [3, 1], strides = [1, 1]} : vector<3x3xf32> to vector<3x1xf32>
    %cst_71 = arith.constant 0.000000e+00 : f32
    %366 = vector.shape_cast %365 : vector<3x1xf32> to vector<3x1xf32>
    %367 = vector.broadcast %366 : vector<3x1xf32> to vector<3x6xf32>
    %368 = vector.broadcast %cst_71 : f32 to vector<3x6xf32>
    %369 = arith.select %364, %367, %368 : vector<3x6xi1>, vector<3x6xf32>
    %370 = arith.addf %362, %369 : vector<3x6xf32>
    %c1_i32_72 = arith.constant 1 : i32
    %371 = vector.broadcast %c1_i32_72 : i32 to vector<3x6xi32>
    %372 = arith.cmpi eq, %296, %371 : vector<3x6xi32>
    %373 = vector.extract_strided_slice %295 {offsets = [0, 0], sizes = [3, 1], strides = [1, 1]} : vector<3x3xf32> to vector<3x1xf32>
    %cst_73 = arith.constant 0.000000e+00 : f32
    %374 = vector.shape_cast %373 : vector<3x1xf32> to vector<3x1xf32>
    %375 = vector.broadcast %374 : vector<3x1xf32> to vector<3x6xf32>
    %376 = vector.broadcast %cst_73 : f32 to vector<3x6xf32>
    %377 = arith.select %372, %375, %376 : vector<3x6xi1>, vector<3x6xf32>
    %378 = arith.addf %370, %377 : vector<3x6xf32>
    %c3_i32_74 = arith.constant 3 : i32
    %379 = vector.broadcast %c3_i32_74 : i32 to vector<3x6xi32>
    %380 = arith.cmpi eq, %296, %379 : vector<3x6xi32>
    %381 = vector.extract_strided_slice %295 {offsets = [0, 1], sizes = [3, 1], strides = [1, 1]} : vector<3x3xf32> to vector<3x1xf32>
    %cst_75 = arith.constant 0.000000e+00 : f32
    %382 = vector.shape_cast %381 : vector<3x1xf32> to vector<3x1xf32>
    %383 = vector.broadcast %382 : vector<3x1xf32> to vector<3x6xf32>
    %384 = vector.broadcast %cst_75 : f32 to vector<3x6xf32>
    %385 = arith.select %380, %383, %384 : vector<3x6xi1>, vector<3x6xf32>
    %386 = arith.addf %378, %385 : vector<3x6xf32>
    %c5_i32_76 = arith.constant 5 : i32
    %387 = vector.broadcast %c5_i32_76 : i32 to vector<3x6xi32>
    %388 = arith.cmpi eq, %296, %387 : vector<3x6xi32>
    %389 = vector.extract_strided_slice %295 {offsets = [0, 2], sizes = [3, 1], strides = [1, 1]} : vector<3x3xf32> to vector<3x1xf32>
    %cst_77 = arith.constant 0.000000e+00 : f32
    %390 = vector.shape_cast %389 : vector<3x1xf32> to vector<3x1xf32>
    %391 = vector.broadcast %390 : vector<3x1xf32> to vector<3x6xf32>
    %392 = vector.broadcast %cst_77 : f32 to vector<3x6xf32>
    %393 = arith.select %388, %391, %392 : vector<3x6xi1>, vector<3x6xf32>
    %394 = arith.addf %386, %393 : vector<3x6xf32>
    %395 = tpu.iota {dimensions = array<i32: 0>} : vector<6x6xi32>
    %cst_78 = arith.constant 0.000000e+00 : f32
    %396 = vector.broadcast %cst_78 : f32 to vector<6x6xf32>
    %c0_i32_79 = arith.constant 0 : i32
    %397 = vector.broadcast %c0_i32_79 : i32 to vector<6x6xi32>
    %398 = arith.cmpi eq, %395, %397 : vector<6x6xi32>
    %399 = vector.extract_strided_slice %345 {offsets = [0, 0], sizes = [1, 6], strides = [1, 1]} : vector<3x6xf32> to vector<1x6xf32>
    %cst_80 = arith.constant 0.000000e+00 : f32
    %400 = vector.shape_cast %399 : vector<1x6xf32> to vector<1x6xf32>
    %401 = vector.broadcast %400 : vector<1x6xf32> to vector<6x6xf32>
    %402 = vector.broadcast %cst_80 : f32 to vector<6x6xf32>
    %403 = arith.select %398, %401, %402 : vector<6x6xi1>, vector<6x6xf32>
    %404 = arith.addf %396, %403 : vector<6x6xf32>
    %c2_i32_81 = arith.constant 2 : i32
    %405 = vector.broadcast %c2_i32_81 : i32 to vector<6x6xi32>
    %406 = arith.cmpi eq, %395, %405 : vector<6x6xi32>
    %407 = vector.extract_strided_slice %345 {offsets = [1, 0], sizes = [1, 6], strides = [1, 1]} : vector<3x6xf32> to vector<1x6xf32>
    %cst_82 = arith.constant 0.000000e+00 : f32
    %408 = vector.shape_cast %407 : vector<1x6xf32> to vector<1x6xf32>
    %409 = vector.broadcast %408 : vector<1x6xf32> to vector<6x6xf32>
    %410 = vector.broadcast %cst_82 : f32 to vector<6x6xf32>
    %411 = arith.select %406, %409, %410 : vector<6x6xi1>, vector<6x6xf32>
    %412 = arith.addf %404, %411 : vector<6x6xf32>
    %c4_i32_83 = arith.constant 4 : i32
    %413 = vector.broadcast %c4_i32_83 : i32 to vector<6x6xi32>
    %414 = arith.cmpi eq, %395, %413 : vector<6x6xi32>
    %415 = vector.extract_strided_slice %345 {offsets = [2, 0], sizes = [1, 6], strides = [1, 1]} : vector<3x6xf32> to vector<1x6xf32>
    %cst_84 = arith.constant 0.000000e+00 : f32
    %416 = vector.shape_cast %415 : vector<1x6xf32> to vector<1x6xf32>
    %417 = vector.broadcast %416 : vector<1x6xf32> to vector<6x6xf32>
    %418 = vector.broadcast %cst_84 : f32 to vector<6x6xf32>
    %419 = arith.select %414, %417, %418 : vector<6x6xi1>, vector<6x6xf32>
    %420 = arith.addf %412, %419 : vector<6x6xf32>
    %c1_i32_85 = arith.constant 1 : i32
    %421 = vector.broadcast %c1_i32_85 : i32 to vector<6x6xi32>
    %422 = arith.cmpi eq, %395, %421 : vector<6x6xi32>
    %423 = vector.extract_strided_slice %394 {offsets = [0, 0], sizes = [1, 6], strides = [1, 1]} : vector<3x6xf32> to vector<1x6xf32>
    %cst_86 = arith.constant 0.000000e+00 : f32
    %424 = vector.shape_cast %423 : vector<1x6xf32> to vector<1x6xf32>
    %425 = vector.broadcast %424 : vector<1x6xf32> to vector<6x6xf32>
    %426 = vector.broadcast %cst_86 : f32 to vector<6x6xf32>
    %427 = arith.select %422, %425, %426 : vector<6x6xi1>, vector<6x6xf32>
    %428 = arith.addf %420, %427 : vector<6x6xf32>
    %c3_i32_87 = arith.constant 3 : i32
    %429 = vector.broadcast %c3_i32_87 : i32 to vector<6x6xi32>
    %430 = arith.cmpi eq, %395, %429 : vector<6x6xi32>
    %431 = vector.extract_strided_slice %394 {offsets = [1, 0], sizes = [1, 6], strides = [1, 1]} : vector<3x6xf32> to vector<1x6xf32>
    %cst_88 = arith.constant 0.000000e+00 : f32
    %432 = vector.shape_cast %431 : vector<1x6xf32> to vector<1x6xf32>
    %433 = vector.broadcast %432 : vector<1x6xf32> to vector<6x6xf32>
    %434 = vector.broadcast %cst_88 : f32 to vector<6x6xf32>
    %435 = arith.select %430, %433, %434 : vector<6x6xi1>, vector<6x6xf32>
    %436 = arith.addf %428, %435 : vector<6x6xf32>
    %c5_i32_89 = arith.constant 5 : i32
    %437 = vector.broadcast %c5_i32_89 : i32 to vector<6x6xi32>
    %438 = arith.cmpi eq, %395, %437 : vector<6x6xi32>
    %439 = vector.extract_strided_slice %394 {offsets = [2, 0], sizes = [1, 6], strides = [1, 1]} : vector<3x6xf32> to vector<1x6xf32>
    %cst_90 = arith.constant 0.000000e+00 : f32
    %440 = vector.shape_cast %439 : vector<1x6xf32> to vector<1x6xf32>
    %441 = vector.broadcast %440 : vector<1x6xf32> to vector<6x6xf32>
    %442 = vector.broadcast %cst_90 : f32 to vector<6x6xf32>
    %443 = arith.select %438, %441, %442 : vector<6x6xi1>, vector<6x6xf32>
    %444 = arith.addf %436, %443 : vector<6x6xf32>
    %445 = vector.extract_strided_slice %231 {offsets = [0, 0], sizes = [5, 5], strides = [1, 1]} : vector<6x6xf32> to vector<5x5xf32>
    %446 = vector.extract_strided_slice %231 {offsets = [0, 1], sizes = [5, 5], strides = [1, 1]} : vector<6x6xf32> to vector<5x5xf32>
    %447 = vector.extract_strided_slice %231 {offsets = [1, 0], sizes = [5, 5], strides = [1, 1]} : vector<6x6xf32> to vector<5x5xf32>
    %448 = vector.extract_strided_slice %231 {offsets = [1, 1], sizes = [5, 5], strides = [1, 1]} : vector<6x6xf32> to vector<5x5xf32>
    %449 = vector.extract_strided_slice %444 {offsets = [0, 0], sizes = [5, 5], strides = [1, 1]} : vector<6x6xf32> to vector<5x5xf32>
    %450 = vector.extract_strided_slice %444 {offsets = [0, 1], sizes = [5, 5], strides = [1, 1]} : vector<6x6xf32> to vector<5x5xf32>
    %451 = vector.extract_strided_slice %444 {offsets = [1, 0], sizes = [5, 5], strides = [1, 1]} : vector<6x6xf32> to vector<5x5xf32>
    %452 = vector.extract_strided_slice %444 {offsets = [1, 1], sizes = [5, 5], strides = [1, 1]} : vector<6x6xf32> to vector<5x5xf32>
    %cst_91 = arith.constant 0.000000e+00 : f32
    %453 = vector.broadcast %cst_91 : f32 to vector<5x5xf32>
    %c0_92 = arith.constant 0 : index
    %454 = memref.load %arg4[%c0_92] : memref<1xf32, #tpu.memory_space<smem>>
    %455 = vector.broadcast %454 : f32 to vector<5x5xf32>
    %456 = arith.addf %453, %455 : vector<5x5xf32>
    %c3_93 = arith.constant 3 : index
    %457 = memref.load %arg3[%c3_93] : memref<8xf32, #tpu.memory_space<smem>>
    %458 = vector.broadcast %457 : f32 to vector<5x5xf32>
    %459 = arith.mulf %458, %445 : vector<5x5xf32>
    %460 = arith.addf %456, %459 : vector<5x5xf32>
    %c7_94 = arith.constant 7 : index
    %461 = memref.load %arg3[%c7_94] : memref<8xf32, #tpu.memory_space<smem>>
    %462 = vector.broadcast %461 : f32 to vector<5x5xf32>
    %463 = arith.mulf %462, %449 : vector<5x5xf32>
    %464 = arith.addf %460, %463 : vector<5x5xf32>
    %cst_95 = arith.constant 0.000000e+00 : f32
    %465 = vector.broadcast %cst_95 : f32 to vector<5x5xf32>
    %c0_96 = arith.constant 0 : index
    %466 = memref.load %arg4[%c0_96] : memref<1xf32, #tpu.memory_space<smem>>
    %467 = vector.broadcast %466 : f32 to vector<5x5xf32>
    %468 = arith.addf %465, %467 : vector<5x5xf32>
    %c2_97 = arith.constant 2 : index
    %469 = memref.load %arg3[%c2_97] : memref<8xf32, #tpu.memory_space<smem>>
    %470 = vector.broadcast %469 : f32 to vector<5x5xf32>
    %471 = arith.mulf %470, %446 : vector<5x5xf32>
    %472 = arith.addf %468, %471 : vector<5x5xf32>
    %c6_98 = arith.constant 6 : index
    %473 = memref.load %arg3[%c6_98] : memref<8xf32, #tpu.memory_space<smem>>
    %474 = vector.broadcast %473 : f32 to vector<5x5xf32>
    %475 = arith.mulf %474, %450 : vector<5x5xf32>
    %476 = arith.addf %472, %475 : vector<5x5xf32>
    %cst_99 = arith.constant 0.000000e+00 : f32
    %477 = vector.broadcast %cst_99 : f32 to vector<5x5xf32>
    %c0_100 = arith.constant 0 : index
    %478 = memref.load %arg4[%c0_100] : memref<1xf32, #tpu.memory_space<smem>>
    %479 = vector.broadcast %478 : f32 to vector<5x5xf32>
    %480 = arith.addf %477, %479 : vector<5x5xf32>
    %c1_101 = arith.constant 1 : index
    %481 = memref.load %arg3[%c1_101] : memref<8xf32, #tpu.memory_space<smem>>
    %482 = vector.broadcast %481 : f32 to vector<5x5xf32>
    %483 = arith.mulf %482, %447 : vector<5x5xf32>
    %484 = arith.addf %480, %483 : vector<5x5xf32>
    %c5_102 = arith.constant 5 : index
    %485 = memref.load %arg3[%c5_102] : memref<8xf32, #tpu.memory_space<smem>>
    %486 = vector.broadcast %485 : f32 to vector<5x5xf32>
    %487 = arith.mulf %486, %451 : vector<5x5xf32>
    %488 = arith.addf %484, %487 : vector<5x5xf32>
    %cst_103 = arith.constant 0.000000e+00 : f32
    %489 = vector.broadcast %cst_103 : f32 to vector<5x5xf32>
    %c0_104 = arith.constant 0 : index
    %490 = memref.load %arg4[%c0_104] : memref<1xf32, #tpu.memory_space<smem>>
    %491 = vector.broadcast %490 : f32 to vector<5x5xf32>
    %492 = arith.addf %489, %491 : vector<5x5xf32>
    %c0_105 = arith.constant 0 : index
    %493 = memref.load %arg3[%c0_105] : memref<8xf32, #tpu.memory_space<smem>>
    %494 = vector.broadcast %493 : f32 to vector<5x5xf32>
    %495 = arith.mulf %494, %448 : vector<5x5xf32>
    %496 = arith.addf %492, %495 : vector<5x5xf32>
    %c4_106 = arith.constant 4 : index
    %497 = memref.load %arg3[%c4_106] : memref<8xf32, #tpu.memory_space<smem>>
    %498 = vector.broadcast %497 : f32 to vector<5x5xf32>
    %499 = arith.mulf %498, %452 : vector<5x5xf32>
    %500 = arith.addf %496, %499 : vector<5x5xf32>
    %501 = tpu.iota {dimensions = array<i32: 1>} : vector<5x10xi32>
    %cst_107 = arith.constant 0.000000e+00 : f32
    %502 = vector.broadcast %cst_107 : f32 to vector<5x10xf32>
    %c0_i32_108 = arith.constant 0 : i32
    %503 = vector.broadcast %c0_i32_108 : i32 to vector<5x10xi32>
    %504 = arith.cmpi eq, %501, %503 : vector<5x10xi32>
    %505 = vector.extract_strided_slice %464 {offsets = [0, 0], sizes = [5, 1], strides = [1, 1]} : vector<5x5xf32> to vector<5x1xf32>
    %cst_109 = arith.constant 0.000000e+00 : f32
    %506 = vector.shape_cast %505 : vector<5x1xf32> to vector<5x1xf32>
    %507 = vector.broadcast %506 : vector<5x1xf32> to vector<5x10xf32>
    %508 = vector.broadcast %cst_109 : f32 to vector<5x10xf32>
    %509 = arith.select %504, %507, %508 : vector<5x10xi1>, vector<5x10xf32>
    %510 = arith.addf %502, %509 : vector<5x10xf32>
    %c2_i32_110 = arith.constant 2 : i32
    %511 = vector.broadcast %c2_i32_110 : i32 to vector<5x10xi32>
    %512 = arith.cmpi eq, %501, %511 : vector<5x10xi32>
    %513 = vector.extract_strided_slice %464 {offsets = [0, 1], sizes = [5, 1], strides = [1, 1]} : vector<5x5xf32> to vector<5x1xf32>
    %cst_111 = arith.constant 0.000000e+00 : f32
    %514 = vector.shape_cast %513 : vector<5x1xf32> to vector<5x1xf32>
    %515 = vector.broadcast %514 : vector<5x1xf32> to vector<5x10xf32>
    %516 = vector.broadcast %cst_111 : f32 to vector<5x10xf32>
    %517 = arith.select %512, %515, %516 : vector<5x10xi1>, vector<5x10xf32>
    %518 = arith.addf %510, %517 : vector<5x10xf32>
    %c4_i32_112 = arith.constant 4 : i32
    %519 = vector.broadcast %c4_i32_112 : i32 to vector<5x10xi32>
    %520 = arith.cmpi eq, %501, %519 : vector<5x10xi32>
    %521 = vector.extract_strided_slice %464 {offsets = [0, 2], sizes = [5, 1], strides = [1, 1]} : vector<5x5xf32> to vector<5x1xf32>
    %cst_113 = arith.constant 0.000000e+00 : f32
    %522 = vector.shape_cast %521 : vector<5x1xf32> to vector<5x1xf32>
    %523 = vector.broadcast %522 : vector<5x1xf32> to vector<5x10xf32>
    %524 = vector.broadcast %cst_113 : f32 to vector<5x10xf32>
    %525 = arith.select %520, %523, %524 : vector<5x10xi1>, vector<5x10xf32>
    %526 = arith.addf %518, %525 : vector<5x10xf32>
    %c6_i32 = arith.constant 6 : i32
    %527 = vector.broadcast %c6_i32 : i32 to vector<5x10xi32>
    %528 = arith.cmpi eq, %501, %527 : vector<5x10xi32>
    %529 = vector.extract_strided_slice %464 {offsets = [0, 3], sizes = [5, 1], strides = [1, 1]} : vector<5x5xf32> to vector<5x1xf32>
    %cst_114 = arith.constant 0.000000e+00 : f32
    %530 = vector.shape_cast %529 : vector<5x1xf32> to vector<5x1xf32>
    %531 = vector.broadcast %530 : vector<5x1xf32> to vector<5x10xf32>
    %532 = vector.broadcast %cst_114 : f32 to vector<5x10xf32>
    %533 = arith.select %528, %531, %532 : vector<5x10xi1>, vector<5x10xf32>
    %534 = arith.addf %526, %533 : vector<5x10xf32>
    %c8_i32 = arith.constant 8 : i32
    %535 = vector.broadcast %c8_i32 : i32 to vector<5x10xi32>
    %536 = arith.cmpi eq, %501, %535 : vector<5x10xi32>
    %537 = vector.extract_strided_slice %464 {offsets = [0, 4], sizes = [5, 1], strides = [1, 1]} : vector<5x5xf32> to vector<5x1xf32>
    %cst_115 = arith.constant 0.000000e+00 : f32
    %538 = vector.shape_cast %537 : vector<5x1xf32> to vector<5x1xf32>
    %539 = vector.broadcast %538 : vector<5x1xf32> to vector<5x10xf32>
    %540 = vector.broadcast %cst_115 : f32 to vector<5x10xf32>
    %541 = arith.select %536, %539, %540 : vector<5x10xi1>, vector<5x10xf32>
    %542 = arith.addf %534, %541 : vector<5x10xf32>
    %c1_i32_116 = arith.constant 1 : i32
    %543 = vector.broadcast %c1_i32_116 : i32 to vector<5x10xi32>
    %544 = arith.cmpi eq, %501, %543 : vector<5x10xi32>
    %545 = vector.extract_strided_slice %476 {offsets = [0, 0], sizes = [5, 1], strides = [1, 1]} : vector<5x5xf32> to vector<5x1xf32>
    %cst_117 = arith.constant 0.000000e+00 : f32
    %546 = vector.shape_cast %545 : vector<5x1xf32> to vector<5x1xf32>
    %547 = vector.broadcast %546 : vector<5x1xf32> to vector<5x10xf32>
    %548 = vector.broadcast %cst_117 : f32 to vector<5x10xf32>
    %549 = arith.select %544, %547, %548 : vector<5x10xi1>, vector<5x10xf32>
    %550 = arith.addf %542, %549 : vector<5x10xf32>
    %c3_i32_118 = arith.constant 3 : i32
    %551 = vector.broadcast %c3_i32_118 : i32 to vector<5x10xi32>
    %552 = arith.cmpi eq, %501, %551 : vector<5x10xi32>
    %553 = vector.extract_strided_slice %476 {offsets = [0, 1], sizes = [5, 1], strides = [1, 1]} : vector<5x5xf32> to vector<5x1xf32>
    %cst_119 = arith.constant 0.000000e+00 : f32
    %554 = vector.shape_cast %553 : vector<5x1xf32> to vector<5x1xf32>
    %555 = vector.broadcast %554 : vector<5x1xf32> to vector<5x10xf32>
    %556 = vector.broadcast %cst_119 : f32 to vector<5x10xf32>
    %557 = arith.select %552, %555, %556 : vector<5x10xi1>, vector<5x10xf32>
    %558 = arith.addf %550, %557 : vector<5x10xf32>
    %c5_i32_120 = arith.constant 5 : i32
    %559 = vector.broadcast %c5_i32_120 : i32 to vector<5x10xi32>
    %560 = arith.cmpi eq, %501, %559 : vector<5x10xi32>
    %561 = vector.extract_strided_slice %476 {offsets = [0, 2], sizes = [5, 1], strides = [1, 1]} : vector<5x5xf32> to vector<5x1xf32>
    %cst_121 = arith.constant 0.000000e+00 : f32
    %562 = vector.shape_cast %561 : vector<5x1xf32> to vector<5x1xf32>
    %563 = vector.broadcast %562 : vector<5x1xf32> to vector<5x10xf32>
    %564 = vector.broadcast %cst_121 : f32 to vector<5x10xf32>
    %565 = arith.select %560, %563, %564 : vector<5x10xi1>, vector<5x10xf32>
    %566 = arith.addf %558, %565 : vector<5x10xf32>
    %c7_i32 = arith.constant 7 : i32
    %567 = vector.broadcast %c7_i32 : i32 to vector<5x10xi32>
    %568 = arith.cmpi eq, %501, %567 : vector<5x10xi32>
    %569 = vector.extract_strided_slice %476 {offsets = [0, 3], sizes = [5, 1], strides = [1, 1]} : vector<5x5xf32> to vector<5x1xf32>
    %cst_122 = arith.constant 0.000000e+00 : f32
    %570 = vector.shape_cast %569 : vector<5x1xf32> to vector<5x1xf32>
    %571 = vector.broadcast %570 : vector<5x1xf32> to vector<5x10xf32>
    %572 = vector.broadcast %cst_122 : f32 to vector<5x10xf32>
    %573 = arith.select %568, %571, %572 : vector<5x10xi1>, vector<5x10xf32>
    %574 = arith.addf %566, %573 : vector<5x10xf32>
    %c9_i32 = arith.constant 9 : i32
    %575 = vector.broadcast %c9_i32 : i32 to vector<5x10xi32>
    %576 = arith.cmpi eq, %501, %575 : vector<5x10xi32>
    %577 = vector.extract_strided_slice %476 {offsets = [0, 4], sizes = [5, 1], strides = [1, 1]} : vector<5x5xf32> to vector<5x1xf32>
    %cst_123 = arith.constant 0.000000e+00 : f32
    %578 = vector.shape_cast %577 : vector<5x1xf32> to vector<5x1xf32>
    %579 = vector.broadcast %578 : vector<5x1xf32> to vector<5x10xf32>
    %580 = vector.broadcast %cst_123 : f32 to vector<5x10xf32>
    %581 = arith.select %576, %579, %580 : vector<5x10xi1>, vector<5x10xf32>
    %582 = arith.addf %574, %581 : vector<5x10xf32>
    %cst_124 = arith.constant 0.000000e+00 : f32
    %583 = vector.broadcast %cst_124 : f32 to vector<5x10xf32>
    %c0_i32_125 = arith.constant 0 : i32
    %584 = vector.broadcast %c0_i32_125 : i32 to vector<5x10xi32>
    %585 = arith.cmpi eq, %501, %584 : vector<5x10xi32>
    %586 = vector.extract_strided_slice %488 {offsets = [0, 0], sizes = [5, 1], strides = [1, 1]} : vector<5x5xf32> to vector<5x1xf32>
    %cst_126 = arith.constant 0.000000e+00 : f32
    %587 = vector.shape_cast %586 : vector<5x1xf32> to vector<5x1xf32>
    %588 = vector.broadcast %587 : vector<5x1xf32> to vector<5x10xf32>
    %589 = vector.broadcast %cst_126 : f32 to vector<5x10xf32>
    %590 = arith.select %585, %588, %589 : vector<5x10xi1>, vector<5x10xf32>
    %591 = arith.addf %583, %590 : vector<5x10xf32>
    %c2_i32_127 = arith.constant 2 : i32
    %592 = vector.broadcast %c2_i32_127 : i32 to vector<5x10xi32>
    %593 = arith.cmpi eq, %501, %592 : vector<5x10xi32>
    %594 = vector.extract_strided_slice %488 {offsets = [0, 1], sizes = [5, 1], strides = [1, 1]} : vector<5x5xf32> to vector<5x1xf32>
    %cst_128 = arith.constant 0.000000e+00 : f32
    %595 = vector.shape_cast %594 : vector<5x1xf32> to vector<5x1xf32>
    %596 = vector.broadcast %595 : vector<5x1xf32> to vector<5x10xf32>
    %597 = vector.broadcast %cst_128 : f32 to vector<5x10xf32>
    %598 = arith.select %593, %596, %597 : vector<5x10xi1>, vector<5x10xf32>
    %599 = arith.addf %591, %598 : vector<5x10xf32>
    %c4_i32_129 = arith.constant 4 : i32
    %600 = vector.broadcast %c4_i32_129 : i32 to vector<5x10xi32>
    %601 = arith.cmpi eq, %501, %600 : vector<5x10xi32>
    %602 = vector.extract_strided_slice %488 {offsets = [0, 2], sizes = [5, 1], strides = [1, 1]} : vector<5x5xf32> to vector<5x1xf32>
    %cst_130 = arith.constant 0.000000e+00 : f32
    %603 = vector.shape_cast %602 : vector<5x1xf32> to vector<5x1xf32>
    %604 = vector.broadcast %603 : vector<5x1xf32> to vector<5x10xf32>
    %605 = vector.broadcast %cst_130 : f32 to vector<5x10xf32>
    %606 = arith.select %601, %604, %605 : vector<5x10xi1>, vector<5x10xf32>
    %607 = arith.addf %599, %606 : vector<5x10xf32>
    %c6_i32_131 = arith.constant 6 : i32
    %608 = vector.broadcast %c6_i32_131 : i32 to vector<5x10xi32>
    %609 = arith.cmpi eq, %501, %608 : vector<5x10xi32>
    %610 = vector.extract_strided_slice %488 {offsets = [0, 3], sizes = [5, 1], strides = [1, 1]} : vector<5x5xf32> to vector<5x1xf32>
    %cst_132 = arith.constant 0.000000e+00 : f32
    %611 = vector.shape_cast %610 : vector<5x1xf32> to vector<5x1xf32>
    %612 = vector.broadcast %611 : vector<5x1xf32> to vector<5x10xf32>
    %613 = vector.broadcast %cst_132 : f32 to vector<5x10xf32>
    %614 = arith.select %609, %612, %613 : vector<5x10xi1>, vector<5x10xf32>
    %615 = arith.addf %607, %614 : vector<5x10xf32>
    %c8_i32_133 = arith.constant 8 : i32
    %616 = vector.broadcast %c8_i32_133 : i32 to vector<5x10xi32>
    %617 = arith.cmpi eq, %501, %616 : vector<5x10xi32>
    %618 = vector.extract_strided_slice %488 {offsets = [0, 4], sizes = [5, 1], strides = [1, 1]} : vector<5x5xf32> to vector<5x1xf32>
    %cst_134 = arith.constant 0.000000e+00 : f32
    %619 = vector.shape_cast %618 : vector<5x1xf32> to vector<5x1xf32>
    %620 = vector.broadcast %619 : vector<5x1xf32> to vector<5x10xf32>
    %621 = vector.broadcast %cst_134 : f32 to vector<5x10xf32>
    %622 = arith.select %617, %620, %621 : vector<5x10xi1>, vector<5x10xf32>
    %623 = arith.addf %615, %622 : vector<5x10xf32>
    %c1_i32_135 = arith.constant 1 : i32
    %624 = vector.broadcast %c1_i32_135 : i32 to vector<5x10xi32>
    %625 = arith.cmpi eq, %501, %624 : vector<5x10xi32>
    %626 = vector.extract_strided_slice %500 {offsets = [0, 0], sizes = [5, 1], strides = [1, 1]} : vector<5x5xf32> to vector<5x1xf32>
    %cst_136 = arith.constant 0.000000e+00 : f32
    %627 = vector.shape_cast %626 : vector<5x1xf32> to vector<5x1xf32>
    %628 = vector.broadcast %627 : vector<5x1xf32> to vector<5x10xf32>
    %629 = vector.broadcast %cst_136 : f32 to vector<5x10xf32>
    %630 = arith.select %625, %628, %629 : vector<5x10xi1>, vector<5x10xf32>
    %631 = arith.addf %623, %630 : vector<5x10xf32>
    %c3_i32_137 = arith.constant 3 : i32
    %632 = vector.broadcast %c3_i32_137 : i32 to vector<5x10xi32>
    %633 = arith.cmpi eq, %501, %632 : vector<5x10xi32>
    %634 = vector.extract_strided_slice %500 {offsets = [0, 1], sizes = [5, 1], strides = [1, 1]} : vector<5x5xf32> to vector<5x1xf32>
    %cst_138 = arith.constant 0.000000e+00 : f32
    %635 = vector.shape_cast %634 : vector<5x1xf32> to vector<5x1xf32>
    %636 = vector.broadcast %635 : vector<5x1xf32> to vector<5x10xf32>
    %637 = vector.broadcast %cst_138 : f32 to vector<5x10xf32>
    %638 = arith.select %633, %636, %637 : vector<5x10xi1>, vector<5x10xf32>
    %639 = arith.addf %631, %638 : vector<5x10xf32>
    %c5_i32_139 = arith.constant 5 : i32
    %640 = vector.broadcast %c5_i32_139 : i32 to vector<5x10xi32>
    %641 = arith.cmpi eq, %501, %640 : vector<5x10xi32>
    %642 = vector.extract_strided_slice %500 {offsets = [0, 2], sizes = [5, 1], strides = [1, 1]} : vector<5x5xf32> to vector<5x1xf32>
    %cst_140 = arith.constant 0.000000e+00 : f32
    %643 = vector.shape_cast %642 : vector<5x1xf32> to vector<5x1xf32>
    %644 = vector.broadcast %643 : vector<5x1xf32> to vector<5x10xf32>
    %645 = vector.broadcast %cst_140 : f32 to vector<5x10xf32>
    %646 = arith.select %641, %644, %645 : vector<5x10xi1>, vector<5x10xf32>
    %647 = arith.addf %639, %646 : vector<5x10xf32>
    %c7_i32_141 = arith.constant 7 : i32
    %648 = vector.broadcast %c7_i32_141 : i32 to vector<5x10xi32>
    %649 = arith.cmpi eq, %501, %648 : vector<5x10xi32>
    %650 = vector.extract_strided_slice %500 {offsets = [0, 3], sizes = [5, 1], strides = [1, 1]} : vector<5x5xf32> to vector<5x1xf32>
    %cst_142 = arith.constant 0.000000e+00 : f32
    %651 = vector.shape_cast %650 : vector<5x1xf32> to vector<5x1xf32>
    %652 = vector.broadcast %651 : vector<5x1xf32> to vector<5x10xf32>
    %653 = vector.broadcast %cst_142 : f32 to vector<5x10xf32>
    %654 = arith.select %649, %652, %653 : vector<5x10xi1>, vector<5x10xf32>
    %655 = arith.addf %647, %654 : vector<5x10xf32>
    %c9_i32_143 = arith.constant 9 : i32
    %656 = vector.broadcast %c9_i32_143 : i32 to vector<5x10xi32>
    %657 = arith.cmpi eq, %501, %656 : vector<5x10xi32>
    %658 = vector.extract_strided_slice %500 {offsets = [0, 4], sizes = [5, 1], strides = [1, 1]} : vector<5x5xf32> to vector<5x1xf32>
    %cst_144 = arith.constant 0.000000e+00 : f32
    %659 = vector.shape_cast %658 : vector<5x1xf32> to vector<5x1xf32>
    %660 = vector.broadcast %659 : vector<5x1xf32> to vector<5x10xf32>
    %661 = vector.broadcast %cst_144 : f32 to vector<5x10xf32>
    %662 = arith.select %657, %660, %661 : vector<5x10xi1>, vector<5x10xf32>
    %663 = arith.addf %655, %662 : vector<5x10xf32>
    %664 = tpu.iota {dimensions = array<i32: 0>} : vector<10x10xi32>
    %cst_145 = arith.constant 0.000000e+00 : f32
    %665 = vector.broadcast %cst_145 : f32 to vector<10x10xf32>
    %c0_i32_146 = arith.constant 0 : i32
    %666 = vector.broadcast %c0_i32_146 : i32 to vector<10x10xi32>
    %667 = arith.cmpi eq, %664, %666 : vector<10x10xi32>
    %668 = vector.extract_strided_slice %582 {offsets = [0, 0], sizes = [1, 10], strides = [1, 1]} : vector<5x10xf32> to vector<1x10xf32>
    %cst_147 = arith.constant 0.000000e+00 : f32
    %669 = vector.shape_cast %668 : vector<1x10xf32> to vector<1x10xf32>
    %670 = vector.broadcast %669 : vector<1x10xf32> to vector<10x10xf32>
    %671 = vector.broadcast %cst_147 : f32 to vector<10x10xf32>
    %672 = arith.select %667, %670, %671 : vector<10x10xi1>, vector<10x10xf32>
    %673 = arith.addf %665, %672 : vector<10x10xf32>
    %c2_i32_148 = arith.constant 2 : i32
    %674 = vector.broadcast %c2_i32_148 : i32 to vector<10x10xi32>
    %675 = arith.cmpi eq, %664, %674 : vector<10x10xi32>
    %676 = vector.extract_strided_slice %582 {offsets = [1, 0], sizes = [1, 10], strides = [1, 1]} : vector<5x10xf32> to vector<1x10xf32>
    %cst_149 = arith.constant 0.000000e+00 : f32
    %677 = vector.shape_cast %676 : vector<1x10xf32> to vector<1x10xf32>
    %678 = vector.broadcast %677 : vector<1x10xf32> to vector<10x10xf32>
    %679 = vector.broadcast %cst_149 : f32 to vector<10x10xf32>
    %680 = arith.select %675, %678, %679 : vector<10x10xi1>, vector<10x10xf32>
    %681 = arith.addf %673, %680 : vector<10x10xf32>
    %c4_i32_150 = arith.constant 4 : i32
    %682 = vector.broadcast %c4_i32_150 : i32 to vector<10x10xi32>
    %683 = arith.cmpi eq, %664, %682 : vector<10x10xi32>
    %684 = vector.extract_strided_slice %582 {offsets = [2, 0], sizes = [1, 10], strides = [1, 1]} : vector<5x10xf32> to vector<1x10xf32>
    %cst_151 = arith.constant 0.000000e+00 : f32
    %685 = vector.shape_cast %684 : vector<1x10xf32> to vector<1x10xf32>
    %686 = vector.broadcast %685 : vector<1x10xf32> to vector<10x10xf32>
    %687 = vector.broadcast %cst_151 : f32 to vector<10x10xf32>
    %688 = arith.select %683, %686, %687 : vector<10x10xi1>, vector<10x10xf32>
    %689 = arith.addf %681, %688 : vector<10x10xf32>
    %c6_i32_152 = arith.constant 6 : i32
    %690 = vector.broadcast %c6_i32_152 : i32 to vector<10x10xi32>
    %691 = arith.cmpi eq, %664, %690 : vector<10x10xi32>
    %692 = vector.extract_strided_slice %582 {offsets = [3, 0], sizes = [1, 10], strides = [1, 1]} : vector<5x10xf32> to vector<1x10xf32>
    %cst_153 = arith.constant 0.000000e+00 : f32
    %693 = vector.shape_cast %692 : vector<1x10xf32> to vector<1x10xf32>
    %694 = vector.broadcast %693 : vector<1x10xf32> to vector<10x10xf32>
    %695 = vector.broadcast %cst_153 : f32 to vector<10x10xf32>
    %696 = arith.select %691, %694, %695 : vector<10x10xi1>, vector<10x10xf32>
    %697 = arith.addf %689, %696 : vector<10x10xf32>
    %c8_i32_154 = arith.constant 8 : i32
    %698 = vector.broadcast %c8_i32_154 : i32 to vector<10x10xi32>
    %699 = arith.cmpi eq, %664, %698 : vector<10x10xi32>
    %700 = vector.extract_strided_slice %582 {offsets = [4, 0], sizes = [1, 10], strides = [1, 1]} : vector<5x10xf32> to vector<1x10xf32>
    %cst_155 = arith.constant 0.000000e+00 : f32
    %701 = vector.shape_cast %700 : vector<1x10xf32> to vector<1x10xf32>
    %702 = vector.broadcast %701 : vector<1x10xf32> to vector<10x10xf32>
    %703 = vector.broadcast %cst_155 : f32 to vector<10x10xf32>
    %704 = arith.select %699, %702, %703 : vector<10x10xi1>, vector<10x10xf32>
    %705 = arith.addf %697, %704 : vector<10x10xf32>
    %c1_i32_156 = arith.constant 1 : i32
    %706 = vector.broadcast %c1_i32_156 : i32 to vector<10x10xi32>
    %707 = arith.cmpi eq, %664, %706 : vector<10x10xi32>
    %708 = vector.extract_strided_slice %663 {offsets = [0, 0], sizes = [1, 10], strides = [1, 1]} : vector<5x10xf32> to vector<1x10xf32>
    %cst_157 = arith.constant 0.000000e+00 : f32
    %709 = vector.shape_cast %708 : vector<1x10xf32> to vector<1x10xf32>
    %710 = vector.broadcast %709 : vector<1x10xf32> to vector<10x10xf32>
    %711 = vector.broadcast %cst_157 : f32 to vector<10x10xf32>
    %712 = arith.select %707, %710, %711 : vector<10x10xi1>, vector<10x10xf32>
    %713 = arith.addf %705, %712 : vector<10x10xf32>
    %c3_i32_158 = arith.constant 3 : i32
    %714 = vector.broadcast %c3_i32_158 : i32 to vector<10x10xi32>
    %715 = arith.cmpi eq, %664, %714 : vector<10x10xi32>
    %716 = vector.extract_strided_slice %663 {offsets = [1, 0], sizes = [1, 10], strides = [1, 1]} : vector<5x10xf32> to vector<1x10xf32>
    %cst_159 = arith.constant 0.000000e+00 : f32
    %717 = vector.shape_cast %716 : vector<1x10xf32> to vector<1x10xf32>
    %718 = vector.broadcast %717 : vector<1x10xf32> to vector<10x10xf32>
    %719 = vector.broadcast %cst_159 : f32 to vector<10x10xf32>
    %720 = arith.select %715, %718, %719 : vector<10x10xi1>, vector<10x10xf32>
    %721 = arith.addf %713, %720 : vector<10x10xf32>
    %c5_i32_160 = arith.constant 5 : i32
    %722 = vector.broadcast %c5_i32_160 : i32 to vector<10x10xi32>
    %723 = arith.cmpi eq, %664, %722 : vector<10x10xi32>
    %724 = vector.extract_strided_slice %663 {offsets = [2, 0], sizes = [1, 10], strides = [1, 1]} : vector<5x10xf32> to vector<1x10xf32>
    %cst_161 = arith.constant 0.000000e+00 : f32
    %725 = vector.shape_cast %724 : vector<1x10xf32> to vector<1x10xf32>
    %726 = vector.broadcast %725 : vector<1x10xf32> to vector<10x10xf32>
    %727 = vector.broadcast %cst_161 : f32 to vector<10x10xf32>
    %728 = arith.select %723, %726, %727 : vector<10x10xi1>, vector<10x10xf32>
    %729 = arith.addf %721, %728 : vector<10x10xf32>
    %c7_i32_162 = arith.constant 7 : i32
    %730 = vector.broadcast %c7_i32_162 : i32 to vector<10x10xi32>
    %731 = arith.cmpi eq, %664, %730 : vector<10x10xi32>
    %732 = vector.extract_strided_slice %663 {offsets = [3, 0], sizes = [1, 10], strides = [1, 1]} : vector<5x10xf32> to vector<1x10xf32>
    %cst_163 = arith.constant 0.000000e+00 : f32
    %733 = vector.shape_cast %732 : vector<1x10xf32> to vector<1x10xf32>
    %734 = vector.broadcast %733 : vector<1x10xf32> to vector<10x10xf32>
    %735 = vector.broadcast %cst_163 : f32 to vector<10x10xf32>
    %736 = arith.select %731, %734, %735 : vector<10x10xi1>, vector<10x10xf32>
    %737 = arith.addf %729, %736 : vector<10x10xf32>
    %c9_i32_164 = arith.constant 9 : i32
    %738 = vector.broadcast %c9_i32_164 : i32 to vector<10x10xi32>
    %739 = arith.cmpi eq, %664, %738 : vector<10x10xi32>
    %740 = vector.extract_strided_slice %663 {offsets = [4, 0], sizes = [1, 10], strides = [1, 1]} : vector<5x10xf32> to vector<1x10xf32>
    %cst_165 = arith.constant 0.000000e+00 : f32
    %741 = vector.shape_cast %740 : vector<1x10xf32> to vector<1x10xf32>
    %742 = vector.broadcast %741 : vector<1x10xf32> to vector<10x10xf32>
    %743 = vector.broadcast %cst_165 : f32 to vector<10x10xf32>
    %744 = arith.select %739, %742, %743 : vector<10x10xi1>, vector<10x10xf32>
    %745 = arith.addf %737, %744 : vector<10x10xf32>
    %cst_166 = arith.constant 0.000000e+00 : f32
    %746 = vector.broadcast %cst_166 : f32 to vector<10x10xf32>
    %747 = arith.subf %746, %745 : vector<10x10xf32>
    %748 = math.exp %747 : vector<10x10xf32>
    %cst_167 = arith.constant 1.000000e+00 : f32
    %749 = vector.broadcast %cst_167 : f32 to vector<10x10xf32>
    %750 = arith.addf %749, %748 : vector<10x10xf32>
    %751 = tpu.reciprocal %750 : vector<10x10xf32> -> vector<10x10xf32>
    %c0_168 = arith.constant 0 : index
    %c0_169 = arith.constant 0 : index
    %c0_170 = arith.constant 0 : index
    %c0_171 = arith.constant 0 : index
    %752 = vector.load %arg6[%c0_168, %c0_169, %c0_170, %c0_171] : memref<1x1x10x10xf32, #tpu.memory_space<vmem>>, vector<1x1x10x10xf32>
    %753 = vector.shape_cast %752 : vector<1x1x10x10xf32> to vector<10x10xf32>
    %754 = vector.shape_cast %751 : vector<10x10xf32> to vector<1x1x10x10xf32>
    tpu.vector_store %arg6[%c0_168, %c0_169, %c0_170, %c0_171], %754 {strides = array<i32>} : memref<1x1x10x10xf32, #tpu.memory_space<vmem>>, vector<1x1x10x10xf32>,
    return
  }
  func.func @transform_0(%arg0: i32) -> i32 {
    %c0_i32 = arith.constant 0 : i32
    %c0_i32_0 = arith.constant 0 : i32
    return %c0_i32 : i32
  }
  func.func @transform_1(%arg0: i32) -> i32 {
    %c0_i32 = arith.constant 0 : i32
    %c0_i32_0 = arith.constant 0 : i32
    return %c0_i32 : i32
  }
  func.func @transform_2(%arg0: i32) -> i32 {
    %c0_i32 = arith.constant 0 : i32
    %c0_i32_0 = arith.constant 0 : i32
    return %c0_i32 : i32
  }
  func.func @transform_3(%arg0: i32) -> i32 {
    %c0_i32 = arith.constant 0 : i32
    %c0_i32_0 = arith.constant 0 : i32
    return %c0_i32 : i32
  }
  func.func @transform_4(%arg0: i32) -> (i32, i32, i32, i32) {
    %c0_i32 = arith.constant 0 : i32
    %c0_i32_0 = arith.constant 0 : i32
    %c0_i32_1 = arith.constant 0 : i32
    %c0_i32_2 = arith.constant 0 : i32
    return %arg0, %c0_i32, %c0_i32_0, %c0_i32_1 : i32, i32, i32, i32
  }
  func.func @transform_5(%arg0: i32) -> (i32, i32, i32, i32) {
    %c0_i32 = arith.constant 0 : i32
    %c0_i32_0 = arith.constant 0 : i32
    %c0_i32_1 = arith.constant 0 : i32
    %c0_i32_2 = arith.constant 0 : i32
    return %arg0, %c0_i32, %c0_i32_0, %c0_i32_1 : i32, i32, i32, i32
  }
}

</mosaic_0001>

<bundles_post_ra>
// kernel: model_forward.1
= control target key start
LH: loop header
LB: loop body
LE: loop exit
PB: predicated region body
PF: predicated region fallthrough
CT: control target
= control target key end

     0   :  { %11 = vsyncpa [#allocation4], 0  ;;  %s1063_s0 = inlined_call_operand.vmem [shape: f32[24], index: 0, kind: input, shape index: {}]   ;;  %s1064_s1 = inlined_call_operand.vmem [shape: f32[2], index: 1, kind: input, shape index: {}]   ;;  %s1065_s2 = inlined_call_operand.vmem [shape: f32[8], index: 2, kind: input, shape index: {}]   ;;  %s1066_s3 = inlined_call_operand.<no memory space> [shape: f32[1], index: 3, kind: input, shape index: {}]   ;;  %s1067_s4 = inlined_call_operand.vmem [shape: f32[1,3,4,4], index: 4, kind: input, shape index: {}]   ;;  %s1068_s5 = inlined_call_operand.vmem [shape: f32[1,1,10,10], index: 5, kind: output, shape index: {}]  }
   0x1   :  { %12 = vsyncpa [#allocation6], 0  ;;  %s27_s20 = sshll.u32 %s1064_s1, 4  ;;  %s18_s23 = sshll.u32 %s1063_s0, 4  ;;  %s28_s20 = int_to_ptr.vmem [resolvable:$true] %s27_s20  ;;  %s19_s23 = int_to_ptr.vmem [resolvable:$true] %s18_s23 }
   0x2   :  { %s769_s24 = smov [#allocation5]   ;;  %s770_s25 = smov [#allocation3]  }
   0x3   :  { %30 = dma.vmem_to_smem %s28_s20, 16, %s769_s24, [#allocation6]  }
   0x4   :  { %21 = dma.vmem_to_smem %s19_s23, 16, %s770_s25, [#allocation4]  }
   0x5   :  { %s36_s28 = sshll.u32 %s1065_s2, 4  ;;  %s771_s29 = smov [#allocation7]   ;;  %s37_s28 = int_to_ptr.vmem [resolvable:$true] %s36_s28 }
   0x6   :  { %39 = dma.vmem_to_smem %s37_s28, 16, %s771_s29, [#allocation6]  }
   0x7   :  { %765 = dma.done.wait [#allocation4], 16  }
   0x8   :  { %766 = vsyncadd [#allocation4], 4294967280 }
   0x9   :  { %767 = dma.done.wait [#allocation6], 32  }
   0xa   :  { %768 = vsyncadd [#allocation6], 4294967264 }
   0xb   :  { %56 = sfence }
   0xc   :  { %v772_v0 = vmov 2   ;;  %v773_v1 = vmov 0   ;;  %s60_s0 = sld [smem:[#allocation5]]  ;;  %v823_v2 = vld [vmem:[%s1067_s4] sm:$0xf]  ;;  %v774_v37 = vmov 1  }
   0xd   :  { %682 = vset.pattern.permute.xlu1 %v772_v0  ;;  %680 = vset.pattern.permute.xlu0 %v773_v1  ;;  %s640_s1 = sld [smem:[#allocation3 + $0x3]]  ;;  %v828_v3 = vld [vmem:[%s1067_s4 + $0x4] sm:$0xf]  ;;  %v833_v4 = vld [vmem:[%s1067_s4 + $0x8] sm:$0xf]  ;;  %v775_v43 = vmov 3  }
   0xe   :  { %684 = vset.pattern.permute.xlu2 %v772_v0  ;;  %s641_s30 = sld [smem:[#allocation3 + $0xb]] }
   0xf   :  { %s642_s2 = sld [smem:[#allocation3 + $0x13]] }
  0x10   :  { %s643_s6 = sld [smem:[#allocation3 + $0x2]] }
  0x11   :  { %s644_s9 = sld [smem:[#allocation3 + $0xa]] }
  0x12   :  { %s645_s12 = sld [smem:[#allocation3 + $0x12]]  ;;  %v835_v5 = vstv %s60_s0 }
  0x13   :  { %v64_v6 = vstv %s640_s1  ;;  %s652_s15 = sld [smem:[#allocation3 + $0x7]] }
  0x14   :  { %v65_v7 = vmul.f32 %v64_v6, %v823_v2  ;;  %v68_v8 = vstv %s641_s30  ;;  %s651_s16 = sld [smem:[#allocation5 + $0x1]] }
  0x15   :  { %v69_v9 = vmul.f32 %v68_v8, %v828_v3  ;;  %v72_v10 = vstv %s642_s2  ;;  %s653_s17 = sld [smem:[#allocation3 + $0xf]] }
  0x16   :  { %v66_v11 = vadd.f32 %v65_v7, %v835_v5  ;;  %v73_v12 = vmul.f32 %v72_v10, %v833_v4  ;;  %v76_v13 = vstv %s643_s6  ;;  %s646_s4 = sld [smem:[#allocation3 + $0x1]] }
  0x17   :  { %v77_v14 = vmul.f32 %v76_v13, %v823_v2  ;;  %v80_v15 = vstv %s644_s9  ;;  %s647_s18 = sld [smem:[#allocation3 + $0x9]] }
  0x18   :  { %v70_v16 = vadd.f32 %v69_v9, %v66_v11  ;;  %v81_v17 = vmul.f32 %v80_v15, %v828_v3  ;;  %v84_v18 = vstv %s645_s12  ;;  %s654_s19 = sld [smem:[#allocation3 + $0x17]] }
  0x19   :  { %v78_v19 = vadd.f32 %v77_v14, %v835_v5  ;;  %v85_v20 = vmul.f32 %v84_v18, %v833_v4  ;;  %v225_v22 = vstv %s652_s15  ;;  %s648_s20 = sld [smem:[#allocation3 + $0x11]] }
  0x1a   :  { %v74_v21 = vadd.f32 %v73_v12, %v70_v16  ;;  %s99_s21 = sld [smem:[#allocation3]]  ;;  %v226_v25 = vmul.f32 %v225_v22, %v823_v2  ;;  %v846_v27 = vstv %s651_s16 }
  0x1b   :  { %v82_v23 = vadd.f32 %v81_v17, %v78_v19  ;;  %v229_v28 = vstv %s653_s17  ;;  %s649_s22 = sld [smem:[#allocation3 + $0x8]] }
  0x1c   :  { %130 = vperm.xlu1 %682, %v74_v21   ;;  %116 = vperm.xlu0 %680, %v74_v21   ;;  %v88_v26 = vstv %s646_s4  ;;  %v227_v31 = vadd.f32 %v226_v25, %v846_v27  ;;  %v230_v32 = vmul.f32 %v229_v28, %v828_v3  ;;  %s655_s23 = sld [smem:[#allocation3 + $0x6]] }
  0x1d   :  { %v86_v24 = vadd.f32 %v85_v20, %v82_v23  ;;  %v89_v29 = vmul.f32 %v88_v26, %v823_v2  ;;  %v92_v30 = vstv %s647_s18  ;;  %s650_s24 = sld [smem:[#allocation3 + $0x10]] }
  0x1e   :  { %v233_v33 = vstv %s654_s19  ;;  %v93_v35 = vmul.f32 %v92_v30, %v828_v3  ;;  %v231_v39 = vadd.f32 %v230_v32, %v227_v31  ;;  %s656_s25 = sld [smem:[#allocation3 + $0xe]] }
  0x1f   :  { %145 = vperm.xlu2 %684, %v86_v24   ;;  %v90_v34 = vadd.f32 %v89_v29, %v835_v5  ;;  %v96_v36 = vstv %s648_s20  ;;  %v234_v40 = vmul.f32 %v233_v33, %v833_v4  ;;  %s657_s26 = sld [smem:[#allocation3 + $0x16]]  ;;  %v111_v29 = vlaneseq }
  0x20   :  { %v100_v38 = vstv %s99_s21  ;;  %v97_v42 = vmul.f32 %v96_v36, %v833_v4  ;;  %s661_s27 = sld [smem:[#allocation3 + $0x4]] }
  0x21   :  { %v94_v41 = vadd.f32 %v93_v35, %v90_v34  ;;  %v101_v44 = vmul.f32 %v100_v38, %v823_v2  ;;  %v104_v45 = vstv %s649_s22  ;;  %v235_v46 = vadd.f32 %v234_v40, %v231_v39  ;;  %s662_s28 = sld [smem:[#allocation3 + $0xc]] }
  0x22   :  { %v105_v49 = vmul.f32 %v104_v45, %v828_v3  ;;  %v237_v50 = vstv %s655_s23  ;;  %s658_s29 = sld [smem:[#allocation3 + $0x5]]  ;;  %v891_v31 = vand.u32 127, %v111_v29 }
  0x23   :  { %v98_v47 = vadd.f32 %v97_v42, %v94_v41  ;;  %v102_v48 = vadd.f32 %v101_v44, %v835_v5  ;;  %v108_v51 = vstv %s650_s24  ;;  %v238_v52 = vmul.f32 %v237_v50, %v823_v2  ;;  %s663_s0 = sld [smem:[#allocation3 + $0x14]] }
  0x24   :  { %683 = vset.pattern.permute.xlu1 %v774_v37  ;;  %681 = vset.pattern.permute.xlu0 %v774_v37  ;;  %v109_v54 = vmul.f32 %v108_v51, %v833_v4  ;;  %v241_v55 = vstv %s656_s25  ;;  %s659_s1 = sld [smem:[#allocation3 + $0xd]]  ;;  %vm113_vm0 = vcmp.eq.s32.totalorder %v891_v31, 0  ;;  %vm121_vm1 = vcmp.eq.s32.totalorder %v891_v31, 2 }
  0x25   :  { %138 = vperm.xlu1 %683, %v86_v24   ;;  %123 = vperm.xlu0 %681, %v74_v21   ;;  %v106_v53 = vadd.f32 %v105_v49, %v102_v48  ;;  %v239_v56 = vadd.f32 %v238_v52, %v846_v27  ;;  %v242_v57 = vmul.f32 %v241_v55, %v828_v3  ;;  %v245_v59 = vstv %s657_s26  ;;  %s660_s30 = sld [smem:[#allocation3 + $0x15]] }
  0x26   :  { %v246_v61 = vmul.f32 %v245_v59, %v833_v4  ;;  %v261_v63 = vstv %s661_s27  ;;  %vm128_vm2 = vcmp.eq.s32.totalorder %v891_v31, 4  ;;  %vm135_vm3 = vcmp.eq.s32.totalorder %v891_v31, 1  ;;  %s664_s2 = sld [smem:[#allocation7 + $0x3]] }
  0x27   :  { %685 = vset.pattern.permute.xlu2 %v775_v43  ;;  %v110_v58 = vadd.f32 %v109_v54, %v106_v53  ;;  %v243_v60 = vadd.f32 %v242_v57, %v239_v56  ;;  %v262_v5 = vmul.f32 %v261_v63, %v823_v2  ;;  %v265_v6 = vstv %s662_s28  ;;  %s665_s6 = sld [smem:[#allocation7 + $0x7]] }
  0x28   :  { %152 = vperm.xlu2 %685, %v86_v24   ;;  %v266_v8 = vmul.f32 %v265_v6, %v828_v3  ;;  %v249_v9 = vstv %s658_s29  ;;  %vm143_vm4 = vcmp.eq.s32.totalorder %v891_v31, 3  ;;  %vm150_vm5 = vcmp.eq.s32.totalorder %v891_v31, 5  ;;  %s666_s7 = sld [smem:[#allocation7 + $0x2]] }
  0x29   :  { %v247_v62 = vadd.f32 %v246_v61, %v243_v60  ;;  %v263_v7 = vadd.f32 %v262_v5, %v846_v27  ;;  %v269_v10 = vstv %s663_s0  ;;  %v250_v13 = vmul.f32 %v249_v9, %v823_v2  ;;  %s667_s8 = sld [smem:[#allocation7 + $0x6]] }
  0x2a   :  { %v270_v12 = vmul.f32 %v269_v10, %v833_v4  ;;  %v253_v14 = vstv %s659_s1  ;;  %v776_v9 = vmov 4   ;;  %s393_s11 = sld [smem:[#allocation7]]  ;;  %vm420_vm12 = vcmp.eq.s32.totalorder %v891_v31, 6 }
  0x2b   :  { %v267_v11 = vadd.f32 %v266_v8, %v263_v7  ;;  %v251_v16 = vadd.f32 %v250_v13, %v846_v27  ;;  %v254_v17 = vmul.f32 %v253_v14, %v828_v3  ;;  %v257_v18 = vstv %s660_s30  ;;  %s668_s12 = sld [smem:[#allocation7 + $0x1]] }
  0x2c   :  { %v258_v20 = vmul.f32 %v257_v18, %v833_v4  ;;  %v929_v8 = vshrl.u32 %v111_v29, 7  ;;  %s670_s13 = sld [smem:[#allocation7 + $0x4]]  ;;  %vm427_vm13 = vcmp.eq.s32.totalorder %v891_v31, 8  ;;  %vm453_vm14 = vcmp.eq.s32.totalorder %v891_v31, 7 }
  0x2d   :  { %686 = vset.pattern.permute.xlu1 %v773_v1  ;;  %280 = vperm.xlu0 %681, %v235_v46   ;;  %v271_v15 = vadd.f32 %v270_v12, %v267_v11  ;;  %v255_v19 = vadd.f32 %v254_v17, %v251_v16  ;;  %s669_s14 = sld [smem:[#allocation7 + $0x5]]  ;;  %vm460_vm15 = vcmp.eq.s32.totalorder %v891_v31, 9 }
  0x2e   :  { %159 = vperm.xlu1 %686, %v98_v47   ;;  %vm197_vm6 = vcmp.eq.s32.totalorder %v929_v8, 0  ;;  %vm201_vm7 = vcmp.eq.s32.totalorder %v929_v8, 2  ;;  %vm205_vm8 = vcmp.eq.s32.totalorder %v929_v8, 4  ;;  %vm209_vm9 = vcmp.eq.s32.totalorder %v929_v8, 1 }
  0x2f   :  { %v259_v2 = vadd.f32 %v258_v20, %v255_v19  ;;  %vm213_vm10 = vcmp.eq.s32.totalorder %v929_v8, 3  ;;  %vm217_vm11 = vcmp.eq.s32.totalorder %v929_v8, 5 }
  0x30   :  { %687 = vset.pattern.permute.xlu2 %v774_v37 }
  0x31   :  { %165 = vperm.xlu2 %687, %v98_v47  }
  0x35   :  { %692 = vset.pattern.permute.xlu0 %v772_v0 }
  0x36   :  { %688 = vset.pattern.permute.xlu1 %v774_v37  ;;  %171 = vperm.xlu0 %692, %v98_v47  }
  0x37   :  { %178 = vperm.xlu1 %688, %v110_v58  }
  0x39   :  { %689 = vset.pattern.permute.xlu2 %v772_v0 }
  0x3a   :  { %184 = vperm.xlu2 %689, %v110_v58  }
  0x3e   :  { %299 = vperm.xlu0 %692, %v247_v62  }
  0x3f   :  { %690 = vset.pattern.permute.xlu1 %v775_v43 }
  0x40   :  { %190 = vperm.xlu1 %690, %v110_v58  }
  0x42   :  { %691 = vset.pattern.permute.xlu2 %v773_v1 }
  0x43   :  { %274 = vperm.xlu2 %691, %v235_v46  }
  0x46   :  { %700 = vset.pattern.permute.xlu0 %v775_v43 }
  0x47   :  { %343 = vperm.xlu0 %700, %v271_v15  }
  0x48   :  { %693 = vset.pattern.permute.xlu1 %v772_v0 }
  0x49   :  { %286 = vperm.xlu1 %693, %v235_v46  }
  0x4b   :  { %694 = vset.pattern.permute.xlu2 %v774_v37 }
  0x4c   :  { %293 = vperm.xlu2 %694, %v247_v62  }
  0x4f   :  { %705 = vset.pattern.permute.xlu0 %v776_v9 }
  0x51   :  { %695 = vset.pattern.permute.xlu1 %v773_v1 }
  0x52   :  { %312 = vperm.xlu1 %695, %v259_v2  }
  0x54   :  { %318 = vperm.xlu2 %694, %v259_v2  }
  0x5a   :  { %696 = vset.pattern.permute.xlu1 %v772_v0 }
  0x5b   :  { %324 = vperm.xlu1 %696, %v259_v2  }
  0x5c   :  { %697 = vset.pattern.permute.xlu2 %v775_v43 }
  0x5d   :  { %305 = vperm.xlu2 %697, %v247_v62  }
  0x63   :  { %698 = vset.pattern.permute.xlu1 %v774_v37 }
  0x64   :  { %331 = vperm.xlu1 %698, %v271_v15  }
  0x65   :  { %699 = vset.pattern.permute.xlu2 %v772_v0 }
  0x66   :  { %337 = vperm.xlu2 %699, %v271_v15  }
  0x6c   :  { %701 = vset.pattern.permute.xlu1 %v773_v1 }
  0x6e   :  { %702 = vset.pattern.permute.xlu2 %v774_v37 }
  0x79   :  { %v146_v3 = vpop.permute.xlu2 %145 }
  0x7a   :  { %v148_v53 = vsel %vm143_vm4, %v146_v3, 0.0 }
  0x82   :  { %v153_v21 = vpop.permute.xlu2 %152 }
  0x83   :  { %v155_v61 = vsel %vm150_vm5, %v153_v21, 0.0 }
  0x8b   :  { %v166_v23 = vpop.permute.xlu2 %165 }
  0x8c   :  { %v168_v45 = vsel %vm121_vm1, %v166_v23, 0.0 }
  0x8e   :  { %v131_v4 = vpop.permute.xlu1 %130  ;;  %v117_v24 = vpop.permute.xlu0 %116 }
  0x8f   :  { %v119_v34 = vsel %vm113_vm0, %v117_v24, 0.0  ;;  %v133_v39 = vsel %vm128_vm2, %v131_v4, 0.0 }
  0x94   :  { %v185_v26 = vpop.permute.xlu2 %184 }
  0x95   :  { %v187_v7 = vsel %vm143_vm4, %v185_v26, 0.0 }
  0x97   :  { %v139_v22 = vpop.permute.xlu1 %138  ;;  %v124_v27 = vpop.permute.xlu0 %123 }
  0x98   :  { %v126_v35 = vsel %vm121_vm1, %v124_v27, 0.0  ;;  %v141_v44 = vsel %vm135_vm3, %v139_v22, 0.0 }
  0x99   :  { %v127_v36 = vadd.f32 %v126_v35, %v119_v34 }
  0x9b   :  { %v134_v40 = vadd.f32 %v133_v39, %v127_v36 }
  0x9d   :  { %v275_v30 = vpop.permute.xlu2 %274  ;;  %v142_v47 = vadd.f32 %v141_v44, %v134_v40 }
  0x9e   :  { %v277_v50 = vsel %vm113_vm0, %v275_v30, 0.0 }
  0x9f   :  { %v281_v32 = vpop.permute.xlu0 %280  ;;  %v149_v55 = vadd.f32 %v148_v53, %v142_v47 }
  0xa0   :  { %v160_v25 = vpop.permute.xlu1 %159  ;;  %v283_v48 = vsel %vm121_vm1, %v281_v32, 0.0 }
  0xa1   :  { %v162_v46 = vsel %vm113_vm0, %v160_v25, 0.0  ;;  %v284_v57 = vadd.f32 %v283_v48, %v277_v50  ;;  %v156_v63 = vadd.f32 %v155_v61, %v149_v55 }
  0xa2   :  { %v169_v51 = vadd.f32 %v168_v45, %v162_v46 }
  0xa3   :  { %v198_v13 = vperm.slane %v156_v63, 0  ;;  %v202_v14 = vperm.slane %v156_v63, 1  ;;  %v206_v4 = vperm.slane %v156_v63, 2  ;;  %v370_v63 = vstv %s664_s2 }
  0xa5   :  { %v199_v2 = vsel %vm197_vm6, %v198_v13, 0.0  ;;  %v203_v3 = vsel %vm201_vm7, %v202_v14, 0.0  ;;  %v207_v25 = vsel %vm205_vm8, %v206_v4, 0.0  ;;  %v374_v13 = vstv %s665_s6 }
  0xa6   :  { %v294_v38 = vpop.permute.xlu2 %293  ;;  %v204_v23 = vadd.f32 %v203_v3, %v199_v2 }
  0xa7   :  { %v296_v62 = vsel %vm135_vm3, %v294_v38, 0.0 }
  0xa8   :  { %v172_v42 = vpop.permute.xlu0 %171  ;;  %v208_v34 = vadd.f32 %v207_v25, %v204_v23  ;;  %v398_v23 = vstv %s670_s13 }
  0xa9   :  { %v179_v28 = vpop.permute.xlu1 %178  ;;  %v174_v49 = vsel %vm128_vm2, %v172_v42, 0.0 }
  0xaa   :  { %v175_v56 = vadd.f32 %v174_v49, %v169_v51  ;;  %v181_v58 = vsel %vm135_vm3, %v179_v28, 0.0 }
  0xac   :  { %v182_v5 = vadd.f32 %v181_v58, %v175_v56 }
  0xae   :  { %v319_v52 = vpop.permute.xlu2 %318  ;;  %v188_v15 = vadd.f32 %v187_v7, %v182_v5 }
  0xaf   :  { %v321_v26 = vsel %vm121_vm1, %v319_v52, 0.0 }
  0xb0   :  { %v300_v6 = vpop.permute.xlu0 %299 }
  0xb1   :  { %v302_v12 = vsel %vm143_vm4, %v300_v6, 0.0 }
  0xb2   :  { %v191_v33 = vpop.permute.xlu1 %190 }
  0xb3   :  { %v193_v11 = vsel %vm150_vm5, %v191_v33, 0.0 }
  0xb4   :  { %v194_v17 = vadd.f32 %v193_v11, %v188_v15 }
  0xb6   :  { %v210_v21 = vperm.slane %v194_v17, 1  ;;  %v214_v35 = vperm.slane %v194_v17, 2  ;;  %v218_v49 = vperm.slane %v194_v17, 3 }
  0xb7   :  { %v306_v16 = vpop.permute.xlu2 %305 }
  0xb8   :  { %v308_v19 = vsel %vm150_vm5, %v306_v16, 0.0  ;;  %v211_v28 = vsel %vm209_vm9, %v210_v21, 0.0  ;;  %v215_v48 = vsel %vm213_vm10, %v214_v35, 0.0  ;;  %v219_v55 = vsel %vm217_vm11, %v218_v49, 0.0 }
  0xb9   :  { %v344_v39 = vpop.permute.xlu0 %343  ;;  %v212_v40 = vadd.f32 %v211_v28, %v208_v34  ;;  %v394_v21 = vstv %s393_s11  ;;  %v777_v34 = vmov 5  }
  0xba   :  { %v346_v47 = vsel %vm150_vm5, %v344_v39, 0.0 }
  0xbb   :  { %v287_v41 = vpop.permute.xlu1 %286  ;;  %v216_v52 = vadd.f32 %v215_v48, %v212_v40 }
  0xbc   :  { %v289_v54 = vsel %vm128_vm2, %v287_v41, 0.0 }
  0xbd   :  { %v290_v59 = vadd.f32 %v289_v54, %v284_v57 }
  0xbf   :  { %v297_v10 = vadd.f32 %v296_v62, %v290_v59  ;;  %v220_v59 = vadd.f32 %v219_v55, %v216_v52 }
  0xc0   :  { %v338_v33 = vpop.permute.xlu2 %337 }
  0xc1   :  { %v303_v18 = vadd.f32 %v302_v12, %v297_v10  ;;  %v340_v42 = vsel %vm143_vm4, %v338_v33, 0.0  ;;  %v371_v10 = vmul.f32 %v370_v63, %v220_v59  ;;  %v367_v12 = vstv %s1066_s3 }
  0xc2   :  { %v395_v25 = vmul.f32 %v394_v21, %v220_v59 }
  0xc3   :  { %v309_v22 = vadd.f32 %v308_v19, %v303_v18  ;;  %v372_v15 = vadd.f32 %v371_v10, %v367_v12  ;;  %v378_v18 = vstv %s666_s7  ;;  %v382_v19 = vstv %s667_s8 }
  0xc4   :  { %v313_v60 = vpop.permute.xlu1 %312 }
  0xc5   :  { %v315_v24 = vsel %vm113_vm0, %v313_v60, 0.0  ;;  %v348_v29 = vperm.slane %v309_v22, 0  ;;  %v351_v30 = vperm.slane %v309_v22, 1  ;;  %v354_v50 = vperm.slane %v309_v22, 2 }
  0xc6   :  { %v322_v32 = vadd.f32 %v321_v26, %v315_v24  ;;  %v386_v22 = vstv %s668_s12  ;;  %v390_v24 = vstv %s669_s14 }
  0xc7   :  { %v349_v44 = vsel %vm197_vm6, %v348_v29, 0.0  ;;  %v352_v45 = vsel %vm201_vm7, %v351_v30, 0.0  ;;  %v355_v56 = vsel %vm205_vm8, %v354_v50, 0.0  ;;  %v387_v26 = vmul.f32 %v386_v22, %v220_v59 }
  0xc8   :  { %v353_v53 = vadd.f32 %v352_v45, %v349_v44  ;;  %v396_v29 = vadd.f32 %v395_v25, %v367_v12 }
  0xc9   :  { %v388_v30 = vadd.f32 %v387_v26, %v367_v12 }
  0xca   :  { %v356_v60 = vadd.f32 %v355_v56, %v353_v53 }
  0xcd   :  { %v325_v20 = vpop.permute.xlu1 %324 }
  0xce   :  { %v327_v27 = vsel %vm128_vm2, %v325_v20, 0.0  ;;  %v379_v20 = vmul.f32 %v378_v18, %v220_v59 }
  0xcf   :  { %v328_v36 = vadd.f32 %v327_v27, %v322_v32 }
  0xd0   :  { %v380_v3 = vadd.f32 %v379_v20, %v367_v12 }
  0xd6   :  { %v332_v38 = vpop.permute.xlu1 %331 }
  0xd7   :  { %v334_v41 = vsel %vm135_vm3, %v332_v38, 0.0 }
  0xd8   :  { %v335_v46 = vadd.f32 %v334_v41, %v328_v36 }
  0xda   :  { %v341_v51 = vadd.f32 %v340_v42, %v335_v46 }
  0xdc   :  { %v347_v54 = vadd.f32 %v346_v47, %v341_v51 }
  0xde   :  { %v357_v57 = vperm.slane %v347_v54, 1  ;;  %v360_v58 = vperm.slane %v347_v54, 2  ;;  %v363_v62 = vperm.slane %v347_v54, 3 }
  0xe0   :  { %v358_v61 = vsel %vm209_vm9, %v357_v57, 0.0  ;;  %v361_v6 = vsel %vm213_vm10, %v360_v58, 0.0  ;;  %v364_v11 = vsel %vm217_vm11, %v363_v62, 0.0 }
  0xe1   :  { %v359_v5 = vadd.f32 %v358_v61, %v356_v60 }
  0xe3   :  { %v362_v7 = vadd.f32 %v361_v6, %v359_v5 }
  0xe5   :  { %v365_v14 = vadd.f32 %v364_v11, %v362_v7 }
  0xe7   :  { %v375_v16 = vmul.f32 %v374_v13, %v365_v14  ;;  %v383_v2 = vmul.f32 %v382_v19, %v365_v14  ;;  %v399_v27 = vmul.f32 %v398_v23, %v365_v14  ;;  %v391_v28 = vmul.f32 %v390_v24, %v365_v14 }
  0xe9   :  { %v376_v17 = vadd.f32 %v375_v16, %v372_v15  ;;  %v384_v4 = vadd.f32 %v383_v2, %v380_v3  ;;  %v400_v32 = vadd.f32 %v399_v27, %v396_v29  ;;  %v392_v33 = vadd.f32 %v391_v28, %v388_v30 }
  0xeb   :  { %429 = vperm.xlu0 %705, %v376_v17   ;;  %409 = vperm.xlu2 %702, %v376_v17  }
  0xec   :  { %403 = vperm.xlu1 %701, %v376_v17  }
  0xf3   :  { %710 = vset.pattern.permute.xlu0 %v772_v0  ;;  %704 = vset.pattern.permute.xlu2 %v775_v43 }
  0xf4   :  { %703 = vset.pattern.permute.xlu1 %v772_v0  ;;  %442 = vperm.xlu0 %710, %v384_v4  }
  0xf5   :  { %422 = vperm.xlu2 %704, %v376_v17   ;;  %415 = vperm.xlu1 %703, %v376_v17  }
  0xfc   :  { %715 = vset.pattern.permute.xlu0 %v774_v37 }
  0xfd   :  { %707 = vset.pattern.permute.xlu2 %v774_v37  ;;  %706 = vset.pattern.permute.xlu1 %v773_v1 }
  0xfe   :  { %500 = vperm.xlu0 %715, %v400_v32   ;;  %475 = vperm.xlu2 %707, %v392_v33  }
  0xff   :  { %469 = vperm.xlu1 %706, %v392_v33  }
 0x106   :  { %720 = vset.pattern.permute.xlu0 %v777_v34  ;;  %709 = vset.pattern.permute.xlu2 %v772_v0 }
 0x107   :  { %708 = vset.pattern.permute.xlu1 %v774_v37  ;;  %524 = vperm.xlu0 %720, %v400_v32  }
 0x108   :  { %481 = vperm.xlu2 %709, %v392_v33   ;;  %436 = vperm.xlu1 %708, %v384_v4  }
 0x110   :  { %712 = vset.pattern.permute.xlu2 %v775_v43  ;;  %711 = vset.pattern.permute.xlu1 %v775_v43 }
 0x111   :  { %448 = vperm.xlu2 %712, %v384_v4   ;;  %487 = vperm.xlu1 %711, %v392_v33  }
 0x119   :  { %714 = vset.pattern.permute.xlu2 %v776_v9  ;;  %713 = vset.pattern.permute.xlu1 %v776_v9 }
 0x11a   :  { %455 = vperm.xlu2 %714, %v384_v4   ;;  %493 = vperm.xlu1 %713, %v392_v33  }
 0x122   :  { %717 = vset.pattern.permute.xlu2 %v772_v0  ;;  %716 = vset.pattern.permute.xlu1 %v777_v34  ;;  %v529_v34 = vadd.s32 8, %v929_v8 }
 0x123   :  { %506 = vperm.xlu2 %717, %v400_v32   ;;  %462 = vperm.xlu1 %716, %v384_v4  }
 0x12b   :  { %719 = vset.pattern.permute.xlu2 %v776_v9  ;;  %718 = vset.pattern.permute.xlu1 %v775_v43 }
 0x12c   :  { %518 = vperm.xlu2 %719, %v400_v32   ;;  %512 = vperm.xlu1 %718, %v400_v32  }
 0x145   :  { %v410_v1 = vpop.permute.xlu2 %409 }
 0x146   :  { %v412_v42 = vsel %vm121_vm1, %v410_v1, 0.0 }
 0x14f   :  { %v423_v35 = vpop.permute.xlu2 %422 }
 0x150   :  { %v425_v47 = vsel %vm420_vm12, %v423_v35, 0.0 }
 0x158   :  { %v476_v38 = vpop.permute.xlu2 %475 }
 0x159   :  { %v478_v59 = vsel %vm121_vm1, %v476_v38, 0.0  ;;  %vm556_vm1 = vcmp.eq.s32.totalorder %v529_v34, 8 }
 0x15d   :  { %v430_v44 = vpop.permute.xlu0 %429 }
 0x15e   :  { %v404_v37 = vpop.permute.xlu1 %403  ;;  %v432_v50 = vsel %vm427_vm13, %v430_v44, 0.0 }
 0x15f   :  { %v406_v41 = vsel %vm113_vm0, %v404_v37, 0.0 }
 0x160   :  { %v413_v43 = vadd.f32 %v412_v42, %v406_v41 }
 0x162   :  { %v482_v40 = vpop.permute.xlu2 %481 }
 0x163   :  { %v484_v63 = vsel %vm128_vm2, %v482_v40, 0.0 }
 0x166   :  { %v443_v53 = vpop.permute.xlu0 %442 }
 0x167   :  { %v416_v36 = vpop.permute.xlu1 %415  ;;  %v445_v57 = vsel %vm143_vm4, %v443_v53, 0.0 }
 0x168   :  { %v418_v9 = vsel %vm128_vm2, %v416_v36, 0.0  ;;  %vm588_vm2 = vcmp.eq.s32.totalorder %v529_v34, 9 }
 0x169   :  { %v419_v45 = vadd.f32 %v418_v9, %v413_v43 }
 0x16b   :  { %v449_v46 = vpop.permute.xlu2 %448  ;;  %v426_v48 = vadd.f32 %v425_v47, %v419_v45 }
 0x16c   :  { %v451_v62 = vsel %vm150_vm5, %v449_v46, 0.0 }
 0x16d   :  { %v433_v52 = vadd.f32 %v432_v50, %v426_v48 }
 0x170   :  { %v501_v16 = vpop.permute.xlu0 %500 }
 0x171   :  { %v470_v39 = vpop.permute.xlu1 %469  ;;  %v503_v20 = vsel %vm135_vm3, %v501_v16, 0.0 }
 0x172   :  { %v472_v56 = vsel %vm113_vm0, %v470_v39, 0.0  ;;  %vm548_vm0 = vcmp.eq.s32.totalorder %v929_v8, 6 }
 0x173   :  { %v479_v61 = vadd.f32 %v478_v59, %v472_v56 }
 0x174   :  { %v456_v55 = vpop.permute.xlu2 %455 }
 0x175   :  { %v485_v7 = vadd.f32 %v484_v63, %v479_v61  ;;  %v458_v11 = vsel %vm453_vm14, %v456_v55, 0.0 }
 0x179   :  { %v525_v30 = vpop.permute.xlu0 %524 }
 0x17a   :  { %v437_v0 = vpop.permute.xlu1 %436  ;;  %v527_v36 = vsel %vm460_vm15, %v525_v30, 0.0 }
 0x17b   :  { %v439_v51 = vsel %vm135_vm3, %v437_v0, 0.0  ;;  %vm580_vm3 = vcmp.eq.s32.totalorder %v929_v8, 7 }
 0x17c   :  { %v440_v54 = vadd.f32 %v439_v51, %v433_v52 }
 0x17d   :  { %v507_v12 = vpop.permute.xlu2 %506 }
 0x17e   :  { %v446_v60 = vadd.f32 %v445_v57, %v440_v54  ;;  %v509_v23 = vsel %vm143_vm4, %v507_v12, 0.0 }
 0x180   :  { %v452_v6 = vadd.f32 %v451_v62, %v446_v60 }
 0x182   :  { %v459_v14 = vadd.f32 %v458_v11, %v452_v6 }
 0x183   :  { %v488_v49 = vpop.permute.xlu1 %487 }
 0x184   :  { %v490_v5 = vsel %vm420_vm12, %v488_v49, 0.0 }
 0x185   :  { %v491_v13 = vadd.f32 %v490_v5, %v485_v7 }
 0x186   :  { %v519_v24 = vpop.permute.xlu2 %518 }
 0x187   :  { %v521_v33 = vsel %vm453_vm14, %v519_v24, 0.0 }
 0x18c   :  { %v494_v58 = vpop.permute.xlu1 %493 }
 0x18d   :  { %v496_v10 = vsel %vm427_vm13, %v494_v58, 0.0 }
 0x18e   :  { %v497_v17 = vadd.f32 %v496_v10, %v491_v13 }
 0x190   :  { %v504_v4 = vadd.f32 %v503_v20, %v497_v17 }
 0x192   :  { %v510_v26 = vadd.f32 %v509_v23, %v504_v4 }
 0x195   :  { %v463_v15 = vpop.permute.xlu1 %462 }
 0x196   :  { %v465_v18 = vsel %vm460_vm15, %v463_v15, 0.0 }
 0x197   :  { %v466_v19 = vadd.f32 %v465_v18, %v459_v14 }
 0x199   :  { %v531_v2 = vperm.slane %v466_v19, 0  ;;  %v537_v3 = vperm.slane %v466_v19, 1  ;;  %v543_v25 = vperm.slane %v466_v19, 2  ;;  %v550_v37 = vperm.slane %v466_v19, 3 }
 0x19a   :  { %v557_v40 = vperm.slane %v466_v19, 4 }
 0x19b   :  { %v532_v21 = vsel %vm197_vm6, %v531_v2, 0.0  ;;  %v538_v22 = vsel %vm201_vm7, %v537_v3, 0.0  ;;  %v544_v1 = vsel %vm205_vm8, %v543_v25, 0.0  ;;  %v551_v41 = vsel %vm548_vm0, %v550_v37, 0.0 }
 0x19c   :  { %v540_v28 = vadd.f32 %v538_v22, %v532_v21  ;;  %v559_v46 = vsel %vm556_vm1, %v557_v40, 0.0  ;;  %vm632_vm6 = vcmask 74752  }
 0x19e   :  { %v513_v27 = vpop.permute.xlu1 %512  ;;  %v546_v38 = vadd.f32 %v544_v1, %v540_v28 }
 0x19f   :  { %v515_v29 = vsel %vm150_vm5, %v513_v27, 0.0 }
 0x1a0   :  { %v516_v32 = vadd.f32 %v515_v29, %v510_v26  ;;  %v553_v9 = vadd.f32 %v551_v41, %v546_v38 }
 0x1a2   :  { %v522_v35 = vadd.f32 %v521_v33, %v516_v32 }
 0x1a4   :  { %v528_v39 = vadd.f32 %v527_v36, %v522_v35 }
 0x1a6   :  { %v563_v0 = vperm.slane %v528_v39, 1  ;;  %v569_v42 = vperm.slane %v528_v39, 2  ;;  %v589_v43 = vperm.slane %v528_v39, 5  ;;  %v575_v45 = vperm.slane %v528_v39, 3 }
 0x1a7   :  { %v582_v49 = vperm.slane %v528_v39, 4 }
 0x1a8   :  { %v564_v44 = vsel %vm209_vm9, %v563_v0, 0.0  ;;  %v591_v31 = vsel %vm588_vm2, %v589_v43, 0.0  ;;  %v570_v48 = vsel %vm213_vm10, %v569_v42, 0.0  ;;  %v576_v52 = vsel %vm217_vm11, %v575_v45, 0.0 }
 0x1a9   :  { %v566_v47 = vadd.f32 %v564_v44, %v553_v9  ;;  %v593_v50 = vadd.f32 %v591_v31, %v559_v46  ;;  %v583_v55 = vsel %vm580_vm3, %v582_v49, 0.0  ;;  %vm630_vm11 = vcmask 80896  }
 0x1ab   :  { %v572_v51 = vadd.f32 %v570_v48, %v566_v47  ;;  %v595_v53 = vsub.f32 0.0, %v593_v50 }
 0x1ad   :  { %v578_v54 = vadd.f32 %v576_v52, %v572_v51  ;;  %v598_v56 = vmul.f32 1.442695, %v595_v53 }
 0x1af   :  { %v585_v57 = vadd.f32 %v583_v55, %v578_v54  ;;  %721 = vpow2.f32 %v598_v56 }
 0x1b1   :  { %v594_v58 = vsub.f32 0.0, %v585_v57 }
 0x1b3   :  { %v596_v59 = vmul.f32 1.442695, %v594_v58 }
 0x1b5   :  { %723 = vpow2.f32 %v596_v59  ;;  %v722_v60 = vpop.eup %721 }
 0x1b6   :  { %v601_v61 = vadd.f32 1.0, %v722_v60 }
 0x1b8   :  { %725 = vrcp.f32 %v601_v61  ;;  %v627_v8 = vand.u32 2147483648, %v601_v61  ;;  %v625_v12 = vand.u32 2147483647, %v601_v61  ;;  %vm621_vm5 = vweird.f32 %v601_v61 }
 0x1ba   :  { %v628_v16 = vor.u32 1.1754944e-38, %v627_v8  ;;  %vm626_vm8 = vcmp.eq.f32.partialorder %v625_v12, 8.507059e+37 }
 0x1bb   :  { %v724_v62 = vpop.eup %723 }
 0x1bc   :  { %v600_v63 = vadd.f32 1.0, %v724_v62 }
 0x1be   :  { %727 = vrcp.f32 %v600_v63  ;;  %v726_v5 = vpop.eup %725  ;;  %v613_v17 = vand.u32 2147483648, %v600_v63  ;;  %v611_v20 = vand.u32 2147483647, %v600_v63  ;;  %vm607_vm10 = vweird.f32 %v600_v63 }
 0x1bf   :  { %v617_v6 = vmul.f32 %v726_v5, %v601_v61  ;;  %vm622_vm4 = vweird.f32 %v726_v5 }
 0x1c0   :  { %vm623_vm7 = vmor %vm621_vm5, %vm622_vm4  ;;  %v614_v4 = vor.u32 1.1754944e-38, %v613_v17  ;;  %vm612_vm13 = vcmp.eq.f32.partialorder %v611_v20, 8.507059e+37 }
 0x1c1   :  { %v618_v7 = vsub.f32 1.0, %v617_v6 }
 0x1c3   :  { %v619_v11 = vmul.f32 %v726_v5, %v618_v7 }
 0x1c4   :  { %v728_v10 = vpop.eup %727 }
 0x1c5   :  { %v603_v13 = vmul.f32 %v728_v10, %v600_v63  ;;  %v620_v14 = vadd.f32 %v726_v5, %v619_v11  ;;  %vm608_vm9 = vweird.f32 %v728_v10 }
 0x1c6   :  { %vm609_vm12 = vmor %vm607_vm10, %vm608_vm9 }
 0x1c7   :  { %v604_v15 = vsub.f32 1.0, %v603_v13  ;;  %v624_v18 = vsel %vm623_vm7, %v726_v5, %v620_v14 }
 0x1c8   :  { %v629_v2 = vsel %vm626_vm8, %v628_v16, %v624_v18 }
 0x1c9   :  { %v605_v19 = vmul.f32 %v728_v10, %v604_v15  ;;  %633 = vst.msk [vmem:[%s1068_s5 + $0x8] sm:$0x3] %vm632_vm6, %v629_v2 }
 0x1cb   :  { %v606_v3 = vadd.f32 %v728_v10, %v605_v19 }
 0x1cd   :  { %v610_v21 = vsel %vm609_vm12, %v728_v10, %v606_v3 }
 0x1ce   :  { %v615_v22 = vsel %vm612_vm13, %v614_v4, %v610_v21 }
 0x1cf   :  { %631 = vst.msk [vmem:[%s1068_s5] sm:$0xff] %vm630_vm11, %v615_v22 }
 0x1d0   :  { %638 = vsyncpa [#allocation4], 1 }
 0x1d1   :  { %639 = vsyncpa [#allocation6], 1 }

</bundles_post_ra>
